<compile_context>
chip_gen: v5e
topology: v5e:2x2
jax: 0.10.0
libtpu: 0.0.40
codegen_flags: <defaults>
</compile_context>

<pallas_src>
import math

import jax
import jax.numpy as jnp
from jax import lax
from jax.experimental import pallas as pl
from jax.experimental.pallas import tpu as pltpu


# Safe on all of v5e / v6e / v7x (>= v5e default, <= v7x physical).
_VMEM_LIMIT = 32 * 1024 * 1024


def _is_bf16(dt):
    return jnp.dtype(dt) == jnp.dtype(jnp.bfloat16)


def _silu(y, approx=False):
    # y is f32. On the bf16 path use the approximate EUP reciprocal (its error is
    # subsumed by bf16 rounding); on the f32 path keep the exact divide.
    z = 1.0 + jnp.exp(-y)
    inv = pl.reciprocal(z, approx=True) if approx else 1.0 / z
    return y * inv


def _tile_rows(M, tm):
    """Pick a row tile that is sublane-aligned and divides the padded row count."""
    tm = max(1, min(tm, M))
    if M >= 8:
        tm = max(8, (tm // 8) * 8)
    Mp = ((M + tm - 1) // tm) * tm
    return tm, Mp


def _pad_rows(a, Mp):
    M = a.shape[0]
    if Mp == M:
        return a
    return jnp.pad(a, ((0, Mp - M), (0, 0)))


# ----------------------------- cv1: 1x1 conv, split outputs -----------------------------

def _make_cv1_kernel(approx):
    def kernel(x_ref, w1_ref, w2_ref, s1_ref, b1_ref, s2_ref, b2_ref, o1_ref, o2_ref):
        x = x_ref[...]
        y1 = jnp.dot(x, w1_ref[...], preferred_element_type=jnp.float32)
        o1_ref[...] = _silu(y1 * s1_ref[...] + b1_ref[...], approx).astype(o1_ref.dtype)
        y2 = jnp.dot(x, w2_ref[...], preferred_element_type=jnp.float32)
        o2_ref[...] = _silu(y2 * s2_ref[...] + b2_ref[...], approx).astype(o2_ref.dtype)
    return kernel


def conv1x1_split_bn_silu(x, w, scale, bias, c, compute_dtype, tm=256):
    """x: (N,H,W,Cin), w: (Cin, 2c) -> two (N,H,W,c) outputs (the torch .chunk(2))."""
    N, H, W, Cin = x.shape
    M = N * H * W
    cdt = compute_dtype
    tm, Mp = _tile_rows(M, tm)

    xm = _pad_rows(x.reshape(M, Cin).astype(cdt), Mp)
    wc = w.astype(cdt)
    w1, w2 = wc[:, :c], wc[:, c:]
    s1, b1 = scale[:c].reshape(1, c), bias[:c].reshape(1, c)
    s2, b2 = scale[c:].reshape(1, c), bias[c:].reshape(1, c)

    o1, o2 = pl.pallas_call(
        _make_cv1_kernel(_is_bf16(cdt)),
        out_shape=(jax.ShapeDtypeStruct((Mp, c), cdt),
                   jax.ShapeDtypeStruct((Mp, c), cdt)),
        grid=(Mp // tm,),
        in_specs=[
            pl.BlockSpec((tm, Cin), lambda i: (i, 0)),
            pl.BlockSpec((Cin, c), lambda i: (0, 0)),
            pl.BlockSpec((Cin, c), lambda i: (0, 0)),
            pl.BlockSpec((1, c), lambda i: (0, 0)),
            pl.BlockSpec((1, c), lambda i: (0, 0)),
            pl.BlockSpec((1, c), lambda i: (0, 0)),
            pl.BlockSpec((1, c), lambda i: (0, 0)),
        ],
        out_specs=(pl.BlockSpec((tm, c), lambda i: (i, 0)),
                   pl.BlockSpec((tm, c), lambda i: (i, 0))),
        compiler_params=pltpu.CompilerParams(
            dimension_semantics=("parallel",),
            vmem_limit_bytes=_VMEM_LIMIT),
    )(xm, w1, w2, s1, b1, s2, b2)

    return (o1[:M].reshape(N, H, W, c), o2[:M].reshape(N, H, W, c))


# ----------------------------- cv2: grouped 1x1 conv (no concat) -----------------------------

def _make_group_matmul_kernel(k, approx):
    def kernel(*refs):
        xs = refs[:k]
        ws = refs[k:2 * k]
        s_ref, b_ref, o_ref = refs[2 * k], refs[2 * k + 1], refs[2 * k + 2]
        acc = jnp.dot(xs[0][...], ws[0][...], preferred_element_type=jnp.float32)
        for i in range(1, k):
            acc = acc + jnp.dot(xs[i][...], ws[i][...], preferred_element_type=jnp.float32)
        o_ref[...] = _silu(acc * s_ref[...] + b_ref[...], approx).astype(o_ref.dtype)
    return kernel


def conv1x1_group_bn_silu(chunks, w, scale, bias, out_dtype, compute_dtype, tm=256):
    """concat(chunks, channel) @ w + BN + SiLU, without materializing the concat."""
    N, H, W, _ = chunks[0].shape
    M = N * H * W
    Cout = w.shape[1]
    cdt = compute_dtype
    k = len(chunks)
    widths = [ch.shape[-1] for ch in chunks]
    offs = [0]
    for cw in widths:
        offs.append(offs[-1] + cw)

    tm, Mp = _tile_rows(M, tm)
    xms = [_pad_rows(ch.reshape(M, widths[i]).astype(cdt), Mp) for i, ch in enumerate(chunks)]
    w_chunks = [w[offs[i]:offs[i + 1]].astype(cdt) for i in range(k)]

    in_specs = ([pl.BlockSpec((tm, widths[i]), lambda g: (g, 0)) for i in range(k)]
                + [pl.BlockSpec((widths[i], Cout), lambda g: (0, 0)) for i in range(k)]
                + [pl.BlockSpec((1, Cout), lambda g: (0, 0)),
                   pl.BlockSpec((1, Cout), lambda g: (0, 0))])

    out = pl.pallas_call(
        _make_group_matmul_kernel(k, _is_bf16(cdt)),
        out_shape=jax.ShapeDtypeStruct((Mp, Cout), out_dtype),
        grid=(Mp // tm,),
        in_specs=in_specs,
        out_specs=pl.BlockSpec((tm, Cout), lambda g: (g, 0)),
        compiler_params=pltpu.CompilerParams(
            dimension_semantics=("parallel",),
            vmem_limit_bytes=_VMEM_LIMIT),
    )(*xms, *w_chunks, scale.reshape(1, Cout), bias.reshape(1, Cout))

    return out[:M].reshape(N, H, W, Cout)


# ----------------------------- fused Bottleneck (two 3x3 convs) -----------------------------

def _make_bottleneck_kernel(H, W, c, shortcut, approx):
    c3 = 3 * c

    def _shift_stack(t3):
        # t3: (H, W, c). Build S: (H+2, W, 3c) with S[h', w] = [xp[h', w-1], xp[h', w], xp[h', w+1]]
        # where xp is the zero-padded map -> only 3 shifted copies per conv (not 9).
        dt = t3.dtype
        zc = jnp.zeros((H, 1, c), dt)
        left = jnp.concatenate([zc, t3[:, :W - 1, :]], axis=1)
        right = jnp.concatenate([t3[:, 1:, :], zc], axis=1)
        inner = jnp.concatenate([left, t3, right], axis=-1)          # (H, W, 3c), kw order 0,1,2
        zr = jnp.zeros((1, W, c3), dt)
        return jnp.concatenate([zr, inner, zr], axis=0)              # (H+2, W, 3c)

    def _conv3(stacked, w_ref):
        # Accumulate in vregs (f32); 3 MXU matmuls with K = 3c.
        acc = jnp.dot(stacked[0:H].reshape(H * W, c3), w_ref[0],
                      preferred_element_type=jnp.float32)
        for kh in range(1, 3):                                       # unrolled, static slices
            acc = acc + jnp.dot(stacked[kh:kh + H].reshape(H * W, c3), w_ref[kh],
                                preferred_element_type=jnp.float32)
        return acc

    def kernel(x_ref, w1_ref, s1_ref, b1_ref, w2_ref, s2_ref, b2_ref, o_ref):
        x3 = x_ref[0]                                                # (H, W, c)
        # conv1 + BN + SiLU (intermediate stays on-chip)
        t = _silu(_conv3(_shift_stack(x3), w1_ref) * s1_ref[...] + b1_ref[...], approx)
        t3 = t.astype(x3.dtype).reshape(H, W, c)
        # conv2 + BN + SiLU
        y = _silu(_conv3(_shift_stack(t3), w2_ref) * s2_ref[...] + b2_ref[...], approx)
        if shortcut:
            y = y + x3.reshape(H * W, c).astype(jnp.float32)
        o_ref[0] = y.astype(o_ref.dtype).reshape(H, W, c)

    return kernel


def bottleneck_fused(x, p1, p2, shortcut, compute_dtype):
    """x: (N,H,W,c). p1/p2: {'w': (3,3,c,c), 'scale': (c,), 'bias': (c,)}. One pallas_call."""
    N, H, W, c = x.shape
    cdt = compute_dtype
    w1 = p1["w"].reshape(3, 3 * c, c).astype(cdt)                    # rows ordered [kw][ci] per kh
    w2 = p2["w"].reshape(3, 3 * c, c).astype(cdt)

    out = pl.pallas_call(
        _make_bottleneck_kernel(H, W, c, shortcut, _is_bf16(cdt)),
        out_shape=jax.ShapeDtypeStruct((N, H, W, c), cdt),
        grid=(N,),
        in_specs=[
            pl.BlockSpec((1, H, W, c), lambda n: (n, 0, 0, 0)),
            pl.BlockSpec((3, 3 * c, c), lambda n: (0, 0, 0)),
            pl.BlockSpec((1, c), lambda n: (0, 0)),
            pl.BlockSpec((1, c), lambda n: (0, 0)),
            pl.BlockSpec((3, 3 * c, c), lambda n: (0, 0, 0)),
            pl.BlockSpec((1, c), lambda n: (0, 0)),
            pl.BlockSpec((1, c), lambda n: (0, 0)),
        ],
        out_specs=pl.BlockSpec((1, H, W, c), lambda n: (n, 0, 0, 0)),
        compiler_params=pltpu.CompilerParams(
            dimension_semantics=("parallel",),                       # batch shards across TCs (v7x)
            vmem_limit_bytes=_VMEM_LIMIT),
    )(x.astype(cdt), w1,
      p1["scale"].reshape(1, c), p1["bias"].reshape(1, c),
      w2,
      p2["scale"].reshape(1, c), p2["bias"].reshape(1, c))
    return out


# --------------------------- parameter init (synthetic) ---------------------------

def _fold_bn(gamma, beta, mean, var, eps=1e-5):
    scale = gamma / jnp.sqrt(var + eps)
    bias = beta - mean * scale
    return scale, bias


def _init_conv(key, cin, cout, k):
    kw, kg, kb, km, kv = jax.random.split(key, 5)
    w = jax.random.normal(kw, (k, k, cin, cout), jnp.float32) / math.sqrt(k * k * cin)
    gamma = 1.0 + 0.1 * jax.random.normal(kg, (cout,), jnp.float32)
    beta = 0.1 * jax.random.normal(kb, (cout,), jnp.float32)
    mean = 0.1 * jax.random.normal(km, (cout,), jnp.float32)
    var = jax.random.uniform(kv, (cout,), jnp.float32, minval=0.5, maxval=1.5)
    scale, bias = _fold_bn(gamma, beta, mean, var)
    return {"w": w, "scale": scale, "bias": bias}


def init_c2f_params(key, c1, c2, n=1, e=0.5):
    c = int(c2 * e)
    keys = jax.random.split(key, 2 + 2 * n)
    params = {
        "c": c,
        "cv1": _init_conv(keys[0], c1, 2 * c, 1),
        "cv2": _init_conv(keys[1], (2 + n) * c, c2, 1),
        "m": [],
    }
    for i in range(n):
        params["m"].append({
            "cv1": _init_conv(keys[2 + 2 * i], c, c, 3),
            "cv2": _init_conv(keys[3 + 2 * i], c, c, 3),
        })
    return params


# ------------------------------ C2f forward (Pallas) ------------------------------

def c2f_forward(x_nchw, params, shortcut=False, compute_dtype=jnp.float32, tm=256):
    x = jnp.transpose(x_nchw, (0, 2, 3, 1))                          # NCHW -> NHWC
    c = params["c"]

    p = params["cv1"]
    w = p["w"].reshape(p["w"].shape[2], p["w"].shape[3])
    y1, y2 = conv1x1_split_bn_silu(x, w, p["scale"], p["bias"], c, compute_dtype, tm)
    ys = [y1, y2]

    for mp in params["m"]:
        ys.append(bottleneck_fused(ys[-1], mp["cv1"], mp["cv2"], shortcut, compute_dtype))

    p = params["cv2"]
    w = p["w"].reshape(p["w"].shape[2], p["w"].shape[3])
    out = conv1x1_group_bn_silu(ys, w, p["scale"], p["bias"],
                                x_nchw.dtype, compute_dtype, tm)
    return jnp.transpose(out, (0, 3, 1, 2))                          # back to NCHW


# ------------------------------ pure-JAX reference ------------------------------

def _conv_bn_silu_ref(x, w, scale, bias):
    y = lax.conv_general_dilated(x, w, window_strides=(1, 1), padding="SAME",
                                 dimension_numbers=("NHWC", "HWIO", "NHWC"))
    y = y * scale + bias
    return jax.nn.silu(y)


def c2f_ref(x_nchw, params, shortcut=False):
    x = jnp.transpose(x_nchw, (0, 2, 3, 1))
    c = params["c"]
    p = params["cv1"]
    y = _conv_bn_silu_ref(x, p["w"], p["scale"], p["bias"])
    ys = [y[..., :c], y[..., c:]]
    for mp in params["m"]:
        t = _conv_bn_silu_ref(ys[-1], mp["cv1"]["w"], mp["cv1"]["scale"], mp["cv1"]["bias"])
        t = _conv_bn_silu_ref(t, mp["cv2"]["w"], mp["cv2"]["scale"], mp["cv2"]["bias"])
        if shortcut:
            t = ys[-1] + t
        ys.append(t)
    cat = jnp.concatenate(ys, axis=-1)
    p = params["cv2"]
    out = _conv_bn_silu_ref(cat, p["w"], p["scale"], p["bias"])
    return jnp.transpose(out, (0, 3, 1, 2))


# ------------------------------------ main ------------------------------------

if __name__ == "__main__":
    key = jax.random.PRNGKey(0)
    kx, kp = jax.random.split(key)

    N, C1, H, W = 2, 4, 16, 16      # input (NCHW, matching the PyTorch module)
    C2, n_bottleneck = 8, 2         # C2f(c1=4, c2=8, n=2, shortcut=False)

    x = jax.random.normal(kx, (N, C1, H, W), jnp.float32)
    params = init_c2f_params(kp, C1, C2, n=n_bottleneck, e=0.5)

    ref = jax.block_until_ready(c2f_ref(x, params, shortcut=False))

    # f32 compute path (strict check)
    out_f32 = jax.block_until_ready(
        c2f_forward(x, params, shortcut=False, compute_dtype=jnp.float32))
    assert out_f32.shape == (N, C2, H, W), out_f32.shape
    err32 = float(jnp.max(jnp.abs(out_f32 - ref)))
    assert jnp.allclose(out_f32, ref, rtol=1e-3, atol=1e-3), f"f32 max_err={err32}"

    # bf16 compute path (v6e/v7x optimization; loose sanity check)
    out_bf16 = jax.block_until_ready(
        c2f_forward(x, params, shortcut=False, compute_dtype=jnp.bfloat16))
    errbf = float(jnp.max(jnp.abs(out_bf16.astype(jnp.float32) - ref)))
    assert bool(jnp.all(jnp.isfinite(out_bf16.astype(jnp.float32)))), "bf16 produced non-finite"
    assert errbf < 0.25, f"bf16 max_err={errbf}"

    print("KERNEL_OK")
</pallas_src>

<mosaic_0001>
module attributes {stable_mosaic.version = 11 : i64} {
  func.func @kernel(%arg0: i32, %arg1: memref<256x4xf32, #tpu.memory_space<vmem>>, %arg2: memref<4x4xf32, #tpu.memory_space<vmem>>, %arg3: memref<4x4xf32, #tpu.memory_space<vmem>>, %arg4: memref<1x4xf32, #tpu.memory_space<vmem>>, %arg5: memref<1x4xf32, #tpu.memory_space<vmem>>, %arg6: memref<1x4xf32, #tpu.memory_space<vmem>>, %arg7: memref<1x4xf32, #tpu.memory_space<vmem>>, %arg8: memref<256x4xf32, #tpu.memory_space<vmem>>, %arg9: memref<256x4xf32, #tpu.memory_space<vmem>>) attributes {dimension_semantics = [#tpu.dimension_semantics<parallel>], iteration_bounds = array<i64: 2>, scalar_prefetch = 0 : i64, scratch_operands = 0 : i64, tpu.core_type = #tpu.core_type<tc>, window_params = [{transform_indices = @transform_0, window_bounds = array<i64: 256, 4>}, {pipeline_mode = #tpu.pipeline_mode<synchronous>, transform_indices = @transform_1, window_bounds = array<i64: 4, 4>}, {pipeline_mode = #tpu.pipeline_mode<synchronous>, transform_indices = @transform_2, window_bounds = array<i64: 4, 4>}, {pipeline_mode = #tpu.pipeline_mode<synchronous>, transform_indices = @transform_3, window_bounds = array<i64: 1, 4>}, {pipeline_mode = #tpu.pipeline_mode<synchronous>, transform_indices = @transform_4, window_bounds = array<i64: 1, 4>}, {pipeline_mode = #tpu.pipeline_mode<synchronous>, transform_indices = @transform_5, window_bounds = array<i64: 1, 4>}, {pipeline_mode = #tpu.pipeline_mode<synchronous>, transform_indices = @transform_6, window_bounds = array<i64: 1, 4>}, {transform_indices = @transform_7, window_bounds = array<i64: 256, 4>}, {transform_indices = @transform_8, window_bounds = array<i64: 256, 4>}]} {
    %c0 = arith.constant 0 : index
    %c0_0 = arith.constant 0 : index
    %0 = vector.load %arg1[%c0, %c0_0] : memref<256x4xf32, #tpu.memory_space<vmem>>, vector<256x4xf32>
    %c0_1 = arith.constant 0 : index
    %c0_2 = arith.constant 0 : index
    %1 = vector.load %arg2[%c0_1, %c0_2] : memref<4x4xf32, #tpu.memory_space<vmem>>, vector<4x4xf32>
    %cst = arith.constant dense<0.000000e+00> : vector<256x4xf32>
    %2 = tpu.matmul %0, %1, %cst {dimension_numbers = #tpu.dot_dimension_numbers<[1], [0], [0], [1], [0, 0, 1, 1], [], []>} : vector<256x4xf32>, vector<4x4xf32>, vector<256x4xf32> -> vector<256x4xf32>
    %c0_3 = arith.constant 0 : index
    %c0_4 = arith.constant 0 : index
    %3 = vector.load %arg4[%c0_3, %c0_4] : memref<1x4xf32, #tpu.memory_space<vmem>>, vector<1x4xf32>
    %4 = vector.broadcast %3 : vector<1x4xf32> to vector<256x4xf32>
    %5 = arith.mulf %2, %4 : vector<256x4xf32>
    %c0_5 = arith.constant 0 : index
    %c0_6 = arith.constant 0 : index
    %6 = vector.load %arg5[%c0_5, %c0_6] : memref<1x4xf32, #tpu.memory_space<vmem>>, vector<1x4xf32>
    %7 = vector.broadcast %6 : vector<1x4xf32> to vector<256x4xf32>
    %8 = arith.addf %5, %7 : vector<256x4xf32>
    %cst_7 = arith.constant 0.000000e+00 : f32
    %9 = vector.broadcast %cst_7 : f32 to vector<256x4xf32>
    %10 = arith.subf %9, %8 : vector<256x4xf32>
    %11 = math.exp %10 : vector<256x4xf32>
    %cst_8 = arith.constant 1.000000e+00 : f32
    %12 = vector.broadcast %cst_8 : f32 to vector<256x4xf32>
    %13 = arith.addf %12, %11 : vector<256x4xf32>
    %cst_9 = arith.constant 1.000000e+00 : f32
    %14 = vector.broadcast %cst_9 : f32 to vector<256x4xf32>
    %15 = arith.divf %14, %13 : vector<256x4xf32>
    %16 = arith.mulf %8, %15 : vector<256x4xf32>
    %c0_10 = arith.constant 0 : index
    %c0_11 = arith.constant 0 : index
    %17 = vector.load %arg8[%c0_10, %c0_11] : memref<256x4xf32, #tpu.memory_space<vmem>>, vector<256x4xf32>
    tpu.vector_store %arg8[%c0_10, %c0_11], %16 {strides = array<i32>} : memref<256x4xf32, #tpu.memory_space<vmem>>, vector<256x4xf32>,
    %c0_12 = arith.constant 0 : index
    %c0_13 = arith.constant 0 : index
    %18 = vector.load %arg3[%c0_12, %c0_13] : memref<4x4xf32, #tpu.memory_space<vmem>>, vector<4x4xf32>
    %cst_14 = arith.constant dense<0.000000e+00> : vector<256x4xf32>
    %19 = tpu.matmul %0, %18, %cst_14 {dimension_numbers = #tpu.dot_dimension_numbers<[1], [0], [0], [1], [0, 0, 1, 1], [], []>} : vector<256x4xf32>, vector<4x4xf32>, vector<256x4xf32> -> vector<256x4xf32>
    %c0_15 = arith.constant 0 : index
    %c0_16 = arith.constant 0 : index
    %20 = vector.load %arg6[%c0_15, %c0_16] : memref<1x4xf32, #tpu.memory_space<vmem>>, vector<1x4xf32>
    %21 = vector.broadcast %20 : vector<1x4xf32> to vector<256x4xf32>
    %22 = arith.mulf %19, %21 : vector<256x4xf32>
    %c0_17 = arith.constant 0 : index
    %c0_18 = arith.constant 0 : index
    %23 = vector.load %arg7[%c0_17, %c0_18] : memref<1x4xf32, #tpu.memory_space<vmem>>, vector<1x4xf32>
    %24 = vector.broadcast %23 : vector<1x4xf32> to vector<256x4xf32>
    %25 = arith.addf %22, %24 : vector<256x4xf32>
    %cst_19 = arith.constant 0.000000e+00 : f32
    %26 = vector.broadcast %cst_19 : f32 to vector<256x4xf32>
    %27 = arith.subf %26, %25 : vector<256x4xf32>
    %28 = math.exp %27 : vector<256x4xf32>
    %cst_20 = arith.constant 1.000000e+00 : f32
    %29 = vector.broadcast %cst_20 : f32 to vector<256x4xf32>
    %30 = arith.addf %29, %28 : vector<256x4xf32>
    %cst_21 = arith.constant 1.000000e+00 : f32
    %31 = vector.broadcast %cst_21 : f32 to vector<256x4xf32>
    %32 = arith.divf %31, %30 : vector<256x4xf32>
    %33 = arith.mulf %25, %32 : vector<256x4xf32>
    %c0_22 = arith.constant 0 : index
    %c0_23 = arith.constant 0 : index
    %34 = vector.load %arg9[%c0_22, %c0_23] : memref<256x4xf32, #tpu.memory_space<vmem>>, vector<256x4xf32>
    tpu.vector_store %arg9[%c0_22, %c0_23], %33 {strides = array<i32>} : memref<256x4xf32, #tpu.memory_space<vmem>>, vector<256x4xf32>,
    return
  }
  func.func @transform_0(%arg0: i32) -> (i32, i32) {
    %c0_i32 = arith.constant 0 : i32
    %c0_i32_0 = arith.constant 0 : i32
    return %arg0, %c0_i32 : i32, i32
  }
  func.func @transform_1(%arg0: i32) -> (i32, i32) {
    %c0_i32 = arith.constant 0 : i32
    %c0_i32_0 = arith.constant 0 : i32
    %c0_i32_1 = arith.constant 0 : i32
    return %c0_i32, %c0_i32_0 : i32, i32
  }
  func.func @transform_2(%arg0: i32) -> (i32, i32) {
    %c0_i32 = arith.constant 0 : i32
    %c0_i32_0 = arith.constant 0 : i32
    %c0_i32_1 = arith.constant 0 : i32
    return %c0_i32, %c0_i32_0 : i32, i32
  }
  func.func @transform_3(%arg0: i32) -> (i32, i32) {
    %c0_i32 = arith.constant 0 : i32
    %c0_i32_0 = arith.constant 0 : i32
    %c0_i32_1 = arith.constant 0 : i32
    return %c0_i32, %c0_i32_0 : i32, i32
  }
  func.func @transform_4(%arg0: i32) -> (i32, i32) {
    %c0_i32 = arith.constant 0 : i32
    %c0_i32_0 = arith.constant 0 : i32
    %c0_i32_1 = arith.constant 0 : i32
    return %c0_i32, %c0_i32_0 : i32, i32
  }
  func.func @transform_5(%arg0: i32) -> (i32, i32) {
    %c0_i32 = arith.constant 0 : i32
    %c0_i32_0 = arith.constant 0 : i32
    %c0_i32_1 = arith.constant 0 : i32
    return %c0_i32, %c0_i32_0 : i32, i32
  }
  func.func @transform_6(%arg0: i32) -> (i32, i32) {
    %c0_i32 = arith.constant 0 : i32
    %c0_i32_0 = arith.constant 0 : i32
    %c0_i32_1 = arith.constant 0 : i32
    return %c0_i32, %c0_i32_0 : i32, i32
  }
  func.func @transform_7(%arg0: i32) -> (i32, i32) {
    %c0_i32 = arith.constant 0 : i32
    %c0_i32_0 = arith.constant 0 : i32
    return %arg0, %c0_i32 : i32, i32
  }
  func.func @transform_8(%arg0: i32) -> (i32, i32) {
    %c0_i32 = arith.constant 0 : i32
    %c0_i32_0 = arith.constant 0 : i32
    return %arg0, %c0_i32 : i32, i32
  }
}

</mosaic_0001>

<bundles_post_ra>
// kernel: tpu_custom_call.1
= control target key start
LH: loop header
LB: loop body
LE: loop exit
PB: predicated region body
PF: predicated region fallthrough
CT: control target
= control target key end

     0   :  { %s2675_s27 = smov 0   ;;  %s4317_s0 = inlined_call_operand.vmem [shape: f32[512,4], index: 0, kind: input, shape index: {}]   ;;  %s4318_s1 = inlined_call_operand.vmem [shape: f32[4,4], index: 1, kind: input, shape index: {}]   ;;  %s4319_s2 = inlined_call_operand.vmem [shape: f32[4,4], index: 2, kind: input, shape index: {}]   ;;  %s4320_s3 = inlined_call_operand.vmem [shape: f32[1,4], index: 3, kind: input, shape index: {}]   ;;  %s4321_s4 = inlined_call_operand.vmem [shape: f32[1,4], index: 4, kind: input, shape index: {}]   ;;  %s4322_s5 = inlined_call_operand.vmem [shape: f32[1,4], index: 5, kind: input, shape index: {}]   ;;  %s4323_s6 = inlined_call_operand.vmem [shape: f32[1,4], index: 6, kind: input, shape index: {}]   ;;  %s4324_s7 = inlined_call_operand.vmem [shape: f32[512,4], index: 7, kind: output, shape index: {0}]   ;;  %s4325_s8 = inlined_call_operand.vmem [shape: f32[512,4], index: 8, kind: output, shape index: {1}]  }
   0x1 LB: > { %s2265_s28 = sadd.s32 4294967295, %s2628_s27   ;;  %p2269_p0 = scmp.ge.s32.totalorder %s2628_s27, 1  ;;  %s2628_s27 = sphi %s2675_s27, %s19_s27  }
   0x2   : > { %p266_p1 = scmp.lt.s32.totalorder %s2628_s27, 3 }
   0x4   : > { %p267_p2 = pnand %p2269_p0, %p266_p1 }
   0x5   : > { %s2270_s11 = sshll.u32 (!%p267_p2), %s2265_s28, 5 }
   0x6   : > { %270 = sbr.rel (%p267_p2) target bundleno = 480 (0x1e0), region = 48  ;;  %p306_p3 = scmp.lt.s32.totalorder (!%p267_p2), %s2270_s11, 63 }
   0xb   : > { %v355_v0 = vld [vmem:[%s4318_s1] sm:$0xf]  ;;  %vm453_vm0 = vcmask 1043456   ;;  %s4433_s11 = smov (!%p306_p3, %s2270_s11), 63  ;;  %vm356_vm1 = vcmask 31744  }
   0xc   : > { %v1314_v1 = vld [vmem:[%s4319_s2] sm:$0xf]  ;;  %2276 = vmatpush.msk.msra.mxu0 %vm453_vm0, %v355_v0  ;;  %2344 = vmatpush.msk.msra.mxu2 %vm453_vm0, %v355_v0  ;;  %s2689_s12 = sshll.u32 %s4433_s11, 3 }
   0xd   : > { %2309 = vmatpush.msk.msra.mxu1 %vm453_vm0, %v1314_v1  ;;  %2345 = vmatpush.msk.msra.mxu3 %vm453_vm0, %v1314_v1  ;;  %s2695_s15 = scalar_lea.vmem %s4317_s0, %s2689_s12  ;;  %v2796_v34 = vld [vmem:[%s4320_s3] ss:$0 sm:$0xff]  ;;  %s2929_s26 = scalar_lea.vmem %s4324_s7, %s2689_s12 }
   0xe   : > { %v323_v2 = vld [vmem:[%s2695_s15] sm:$0xff]  ;;  %v324_v4 = vld [vmem:[%s2695_s15 + $0x8] sm:$0xff]  ;;  %v325_v6 = vld [vmem:[%s2695_s15 + $0x10] sm:$0xff]  ;;  %s2939_s30 = scalar_lea.vmem %s4325_s8, %s2689_s12 }
   0xf   : > { %v339_v3 = vld [vmem:[%s2695_s15 + $0x80] sm:$0xff]  ;;  %2277 = vmatmul.msk.f32.vlgmr.msra.gmra.mxu0 %vm356_vm1, %v323_v2  ;;  %2310 = vmatmul.msk.f32.vlgmr.msra.gmra.mxu1 %vm356_vm1, %v323_v2  ;;  %v340_v5 = vld [vmem:[%s2695_s15 + $0x88] sm:$0xff]  ;;  %v341_v7 = vld [vmem:[%s2695_s15 + $0x90] sm:$0xff] }
  0x10   : > { %2293 = vmatmul.msk.f32.vlgmr.msra.gmra.mxu2 %vm356_vm1, %v339_v3  ;;  %2326 = vmatmul.msk.f32.vlgmr.msra.gmra.mxu3 %vm356_vm1, %v339_v3  ;;  %v326_v8 = vld [vmem:[%s2695_s15 + $0x18] sm:$0xff]  ;;  %v327_v10 = vld [vmem:[%s2695_s15 + $0x20] sm:$0xff]  ;;  %v328_v12 = vld [vmem:[%s2695_s15 + $0x28] sm:$0xff] }
  0x11   : > { %v342_v9 = vld [vmem:[%s2695_s15 + $0x98] sm:$0xff]  ;;  %v343_v11 = vld [vmem:[%s2695_s15 + $0xa0] sm:$0xff]  ;;  %v344_v13 = vld [vmem:[%s2695_s15 + $0xa8] sm:$0xff] }
  0x12   : > { %v329_v14 = vld [vmem:[%s2695_s15 + $0x30] sm:$0xff]  ;;  %v330_v16 = vld [vmem:[%s2695_s15 + $0x38] sm:$0xff]  ;;  %v331_v18 = vld [vmem:[%s2695_s15 + $0x40] sm:$0xff] }
  0x13   : > { %v345_v15 = vld [vmem:[%s2695_s15 + $0xb0] sm:$0xff]  ;;  %v346_v17 = vld [vmem:[%s2695_s15 + $0xb8] sm:$0xff]  ;;  %v347_v19 = vld [vmem:[%s2695_s15 + $0xc0] sm:$0xff] }
  0x14   : > { %v332_v20 = vld [vmem:[%s2695_s15 + $0x48] sm:$0xff]  ;;  %v333_v22 = vld [vmem:[%s2695_s15 + $0x50] sm:$0xff]  ;;  %v334_v24 = vld [vmem:[%s2695_s15 + $0x58] sm:$0xff] }
  0x15   : > { %v348_v21 = vld [vmem:[%s2695_s15 + $0xc8] sm:$0xff]  ;;  %v349_v23 = vld [vmem:[%s2695_s15 + $0xd0] sm:$0xff]  ;;  %v350_v25 = vld [vmem:[%s2695_s15 + $0xd8] sm:$0xff] }
  0x16   : > { %v335_v26 = vld [vmem:[%s2695_s15 + $0x60] sm:$0xff]  ;;  %v336_v28 = vld [vmem:[%s2695_s15 + $0x68] sm:$0xff]  ;;  %v337_v30 = vld [vmem:[%s2695_s15 + $0x70] sm:$0xff] }
  0x17   : > { %2278 = vmatmul.msk.f32.gmra.mxu0 %vm356_vm1, %v324_v4  ;;  %2311 = vmatmul.msk.f32.gmra.mxu1 %vm356_vm1, %v324_v4  ;;  %v351_v27 = vld [vmem:[%s2695_s15 + $0xe0] sm:$0xff]  ;;  %v352_v29 = vld [vmem:[%s2695_s15 + $0xe8] sm:$0xff]  ;;  %v353_v31 = vld [vmem:[%s2695_s15 + $0xf0] sm:$0xff] }
  0x18   : > { %2294 = vmatmul.msk.f32.gmra.mxu2 %vm356_vm1, %v340_v5  ;;  %2327 = vmatmul.msk.f32.gmra.mxu3 %vm356_vm1, %v340_v5  ;;  %v338_v32 = vld [vmem:[%s2695_s15 + $0x78] sm:$0xff]  ;;  %v2801_v35 = vld [vmem:[%s4322_s5] ss:$0 sm:$0xff] }
  0x19   : > { %v354_v33 = vld [vmem:[%s2695_s15 + $0xf8] sm:$0xff]  ;;  %v2806_v36 = vld [vmem:[%s4321_s4] ss:$0 sm:$0xff] }
  0x1a   : > { %v2811_v38 = vld [vmem:[%s4323_s6] ss:$0 sm:$0xff] }
  0x1f   : > { %2279 = vmatmul.msk.f32.gmra.mxu0 %vm356_vm1, %v325_v6  ;;  %2312 = vmatmul.msk.f32.gmra.mxu1 %vm356_vm1, %v325_v6 }
  0x20   : > { %2295 = vmatmul.msk.f32.gmra.mxu2 %vm356_vm1, %v341_v7  ;;  %2328 = vmatmul.msk.f32.gmra.mxu3 %vm356_vm1, %v341_v7 }
  0x27   : > { %2280 = vmatmul.msk.f32.gmra.mxu0 %vm356_vm1, %v326_v8  ;;  %2313 = vmatmul.msk.f32.gmra.mxu1 %vm356_vm1, %v326_v8 }
  0x28   : > { %2296 = vmatmul.msk.f32.gmra.mxu2 %vm356_vm1, %v342_v9  ;;  %2329 = vmatmul.msk.f32.gmra.mxu3 %vm356_vm1, %v342_v9 }
  0x2f   : > { %2281 = vmatmul.msk.f32.gmra.mxu0 %vm356_vm1, %v327_v10  ;;  %2314 = vmatmul.msk.f32.gmra.mxu1 %vm356_vm1, %v327_v10 }
  0x30   : > { %2297 = vmatmul.msk.f32.gmra.mxu2 %vm356_vm1, %v343_v11  ;;  %2330 = vmatmul.msk.f32.gmra.mxu3 %vm356_vm1, %v343_v11 }
  0x37   : > { %2282 = vmatmul.msk.f32.gmra.mxu0 %vm356_vm1, %v328_v12  ;;  %2315 = vmatmul.msk.f32.gmra.mxu1 %vm356_vm1, %v328_v12 }
  0x38   : > { %2298 = vmatmul.msk.f32.gmra.mxu2 %vm356_vm1, %v344_v13  ;;  %2331 = vmatmul.msk.f32.gmra.mxu3 %vm356_vm1, %v344_v13 }
  0x3f   : > { %2283 = vmatmul.msk.f32.gmra.mxu0 %vm356_vm1, %v329_v14  ;;  %2316 = vmatmul.msk.f32.gmra.mxu1 %vm356_vm1, %v329_v14 }
  0x40   : > { %2299 = vmatmul.msk.f32.gmra.mxu2 %vm356_vm1, %v345_v15  ;;  %2332 = vmatmul.msk.f32.gmra.mxu3 %vm356_vm1, %v345_v15 }
  0x47   : > { %2284 = vmatmul.msk.f32.gmra.mxu0 %vm356_vm1, %v330_v16  ;;  %2317 = vmatmul.msk.f32.gmra.mxu1 %vm356_vm1, %v330_v16 }
  0x48   : > { %2300 = vmatmul.msk.f32.gmra.mxu2 %vm356_vm1, %v346_v17  ;;  %2333 = vmatmul.msk.f32.gmra.mxu3 %vm356_vm1, %v346_v17 }
  0x4f   : > { %2285 = vmatmul.msk.f32.gmra.mxu0 %vm356_vm1, %v331_v18  ;;  %2318 = vmatmul.msk.f32.gmra.mxu1 %vm356_vm1, %v331_v18 }
  0x50   : > { %2301 = vmatmul.msk.f32.gmra.mxu2 %vm356_vm1, %v347_v19  ;;  %2334 = vmatmul.msk.f32.gmra.mxu3 %vm356_vm1, %v347_v19 }
  0x57   : > { %2286 = vmatmul.msk.f32.gmra.mxu0 %vm356_vm1, %v332_v20  ;;  %2319 = vmatmul.msk.f32.gmra.mxu1 %vm356_vm1, %v332_v20 }
  0x58   : > { %2302 = vmatmul.msk.f32.gmra.mxu2 %vm356_vm1, %v348_v21  ;;  %2335 = vmatmul.msk.f32.gmra.mxu3 %vm356_vm1, %v348_v21 }
  0x5f   : > { %2287 = vmatmul.msk.f32.gmra.mxu0 %vm356_vm1, %v333_v22  ;;  %2320 = vmatmul.msk.f32.gmra.mxu1 %vm356_vm1, %v333_v22 }
  0x60   : > { %2303 = vmatmul.msk.f32.gmra.mxu2 %vm356_vm1, %v349_v23  ;;  %2336 = vmatmul.msk.f32.gmra.mxu3 %vm356_vm1, %v349_v23 }
  0x67   : > { %2288 = vmatmul.msk.f32.gmra.mxu0 %vm356_vm1, %v334_v24  ;;  %2321 = vmatmul.msk.f32.gmra.mxu1 %vm356_vm1, %v334_v24 }
  0x68   : > { %2304 = vmatmul.msk.f32.gmra.mxu2 %vm356_vm1, %v350_v25  ;;  %2337 = vmatmul.msk.f32.gmra.mxu3 %vm356_vm1, %v350_v25 }
  0x6f   : > { %2289 = vmatmul.msk.f32.gmra.mxu0 %vm356_vm1, %v335_v26  ;;  %2322 = vmatmul.msk.f32.gmra.mxu1 %vm356_vm1, %v335_v26 }
  0x70   : > { %2305 = vmatmul.msk.f32.gmra.mxu2 %vm356_vm1, %v351_v27  ;;  %2338 = vmatmul.msk.f32.gmra.mxu3 %vm356_vm1, %v351_v27 }
  0x77   : > { %2290 = vmatmul.msk.f32.gmra.mxu0 %vm356_vm1, %v336_v28  ;;  %2323 = vmatmul.msk.f32.gmra.mxu1 %vm356_vm1, %v336_v28 }
  0x78   : > { %2306 = vmatmul.msk.f32.gmra.mxu2 %vm356_vm1, %v352_v29  ;;  %2339 = vmatmul.msk.f32.gmra.mxu3 %vm356_vm1, %v352_v29 }
  0x7f   : > { %2291 = vmatmul.msk.f32.gmra.mxu0 %vm356_vm1, %v337_v30  ;;  %2324 = vmatmul.msk.f32.gmra.mxu1 %vm356_vm1, %v337_v30 }
  0x80   : > { %2307 = vmatmul.msk.f32.gmra.mxu2 %vm356_vm1, %v353_v31  ;;  %2340 = vmatmul.msk.f32.gmra.mxu3 %vm356_vm1, %v353_v31 }
  0x87   : > { %2292 = vmatmul.msk.f32.gmra.mxu0 %vm356_vm1, %v338_v32  ;;  %2325 = vmatmul.msk.f32.gmra.mxu1 %vm356_vm1, %v338_v32 }
  0x88   : > { %2308 = vmatmul.msk.f32.gmra.mxu2 %vm356_vm1, %v354_v33  ;;  %2341 = vmatmul.msk.f32.gmra.mxu3 %vm356_vm1, %v354_v33 }
  0x8c   : > { %v474_v37 = vpop.f32.mrf.mxu0  ;;  %v1335_v40 = vpop.f32.mrf.mxu1 }
  0x8d   : > { %v574_v39 = vmul.f32 %v2796_v34, %v474_v37  ;;  %v1435_v41 = vmul.f32 %v2801_v35, %v1335_v40 }
  0x8f   : > { %v2816_v42 = vadd.f32 %v2806_v36, %v574_v39  ;;  %v2819_v43 = vadd.f32 %v2811_v38, %v1435_v41 }
  0x91   : > { %v642_v44 = vsub.f32 0.0, %v2816_v42  ;;  %v1503_v45 = vsub.f32 0.0, %v2819_v43 }
  0x93   : > { %v522_v46 = vpop.f32.mrf.mxu2  ;;  %v674_v47 = vmul.f32 1.442695, %v642_v44  ;;  %v1383_v49 = vpop.f32.mrf.mxu3  ;;  %v1535_v50 = vmul.f32 1.442695, %v1503_v45 }
  0x94   : > { %v590_v48 = vmul.f32 %v2796_v34, %v522_v46  ;;  %v1451_v51 = vmul.f32 %v2801_v35, %v1383_v49  ;;  %v477_v52 = vpop.f32.mrf.mxu0  ;;  %v1338_v55 = vpop.f32.mrf.mxu1 }
  0x95   : > { %2358 = vpow2.f32 %v674_v47  ;;  %v575_v54 = vmul.f32 %v2796_v34, %v477_v52  ;;  %v1436_v57 = vmul.f32 %v2801_v35, %v1338_v55 }
  0x96   : > { %v2826_v53 = vadd.f32 %v2806_v36, %v590_v48  ;;  %2360 = vpow2.f32 %v1535_v50  ;;  %v2830_v56 = vadd.f32 %v2811_v38, %v1451_v51 }
  0x97   : > { %v2835_v59 = vadd.f32 %v2806_v36, %v575_v54  ;;  %v2839_v61 = vadd.f32 %v2811_v38, %v1436_v57 }
  0x98   : > { %v658_v58 = vsub.f32 0.0, %v2826_v53  ;;  %v1519_v60 = vsub.f32 0.0, %v2830_v56 }
  0x99   : > { %v643_v63 = vsub.f32 0.0, %v2835_v59  ;;  %v1504_v1 = vsub.f32 0.0, %v2839_v61 }
  0x9a   : > { %v706_v62 = vmul.f32 1.442695, %v658_v58  ;;  %v1567_v0 = vmul.f32 1.442695, %v1519_v60 }
  0x9b   : > { %v525_v2 = vpop.f32.mrf.mxu2  ;;  %v2359_v3 = vpop.eup %2358  ;;  %v676_v4 = vmul.f32 1.442695, %v643_v63  ;;  %v1537_v9 = vmul.f32 1.442695, %v1504_v1 }
  0x9c   : > { %2362 = vpow2.f32 %v706_v62  ;;  %v591_v5 = vmul.f32 %v2796_v34, %v525_v2  ;;  %v1386_v6 = vpop.f32.mrf.mxu3  ;;  %v2361_v7 = vpop.eup %2360  ;;  %v2844_v8 = vadd.f32 1.0, %v2359_v3 }
  0x9d   : > { %2364 = vpow2.f32 %v1567_v0  ;;  %v480_v10 = vpop.f32.mrf.mxu0  ;;  %v2846_v11 = vadd.f32 1.0, %v2361_v7  ;;  %v1452_v13 = vmul.f32 %v2801_v35, %v1386_v6  ;;  %v1341_v25 = vpop.f32.mrf.mxu1 }
  0x9e   : > { %2366 = vpow2.f32 %v676_v4  ;;  %v2849_v12 = vadd.f32 %v2806_v36, %v591_v5  ;;  %v576_v14 = vmul.f32 %v2796_v34, %v480_v10  ;;  %v781_v15 = vand.u32 2147483648, %v2844_v8 }
  0x9f   : > { %2368 = vrcp.f32 %v2844_v8  ;;  %v1642_v16 = vand.u32 2147483648, %v2846_v11  ;;  %v779_v19 = vand.u32 2147483647, %v2844_v8  ;;  %v2860_v20 = vadd.f32 %v2811_v38, %v1452_v13 }
  0xa0   : > { %2370 = vrcp.f32 %v2846_v11  ;;  %v659_v17 = vsub.f32 0.0, %v2849_v12  ;;  %v1640_v22 = vand.u32 2147483647, %v2846_v11  ;;  %v2866_v24 = vadd.f32 %v2806_v36, %v576_v14 }
  0xa1   : > { %2372 = vpow2.f32 %v1537_v9  ;;  %vm775_vm2 = vweird.f32 %v2844_v8  ;;  %vm1636_vm3 = vweird.f32 %v2846_v11  ;;  %v782_v30 = vor.u32 1.1754944e-38, %v781_v15 }
  0xa2   : > { %v2363_v18 = vpop.eup %2362  ;;  %v1643_v31 = vor.u32 1.1754944e-38, %v1642_v16  ;;  %v708_v32 = vmul.f32 1.442695, %v659_v17  ;;  %vm2874_vm4 = vcmp.eq.f32.partialorder %v779_v19, 8.507059e+37  ;;  %v1520_v40 = vsub.f32 0.0, %v2860_v20 }
  0xa3   : > { %v2365_v21 = vpop.eup %2364  ;;  %v2863_v23 = vadd.f32 1.0, %v2363_v18  ;;  %v528_v28 = vpop.f32.mrf.mxu2  ;;  %v2881_v41 = vmul.f32 %v2801_v35, %v1341_v25  ;;  %vm2884_vm5 = vcmp.eq.f32.partialorder %v1640_v22, 8.507059e+37  ;;  %v644_v48 = vsub.f32 0.0, %v2866_v24 }
  0xa4   : > { %v2367_v26 = vpop.eup %2366  ;;  %v2870_v27 = vadd.f32 1.0, %v2365_v21  ;;  %v2891_v49 = vmul.f32 %v2796_v34, %v528_v28  ;;  %v2903_v1 = vmul.f32 1.442695, %v1520_v40 }
  0xa5   : > { %v2369_v29 = vpop.eup %2368  ;;  %2374 = vrcp.f32 %v2863_v23  ;;  %v1021_v47 = vand.u32 2147483648, %v2863_v23  ;;  %v1019_v51 = vand.u32 2147483647, %v2863_v23  ;;  %v2895_v54 = vadd.f32 1.0, %v2367_v26 }
  0xa6   : > { %v2371_v33 = vpop.eup %2370  ;;  %v771_v37 = vmul.f32 %v2369_v29, %v2844_v8  ;;  %2376 = vrcp.f32 %v2870_v27  ;;  %v1882_v52 = vand.u32 2147483648, %v2870_v27  ;;  %v1880_v57 = vand.u32 2147483647, %v2870_v27 }
  0xa7   : > { %v2373_v44 = vpop.eup %2372  ;;  %v1632_v45 = vmul.f32 %v2371_v33, %v2846_v11  ;;  %2378 = vpow2.f32 %v708_v32  ;;  %vm776_vm6 = vweird.f32 %v2369_v29  ;;  %vm1015_vm7 = vweird.f32 %v2863_v23 }
  0xa8   : > { %v772_v50 = vsub.f32 1.0, %v771_v37  ;;  %v2898_v58 = vadd.f32 1.0, %v2373_v44  ;;  %2380 = vrcp.f32 %v2895_v54  ;;  %vm1637_vm8 = vweird.f32 %v2371_v33  ;;  %vm777_vm11 = vmor %vm775_vm2, %vm776_vm6 }
  0xa9   : > { %v1633_v55 = vsub.f32 1.0, %v1632_v45  ;;  %v1022_v0 = vor.u32 1.1754944e-38, %v1021_v47  ;;  %vm1876_vm9 = vweird.f32 %v2870_v27  ;;  %vm2906_vm10 = vcmp.eq.f32.partialorder %v1019_v51, 8.507059e+37  ;;  %vm1638_vm14 = vmor %vm1636_vm3, %vm1637_vm8 }
  0xaa   : > { %v773_v60 = vmul.f32 %v2369_v29, %v772_v50  ;;  %v1883_v6 = vor.u32 1.1754944e-38, %v1882_v52  ;;  %2382 = vrcp.f32 %v2898_v58  ;;  %vm2915_vm12 = vcmp.eq.f32.partialorder %v1880_v57, 8.507059e+37 }
  0xab   : > { %v2375_v62 = vpop.eup %2374  ;;  %v1634_v63 = vmul.f32 %v2371_v33, %v1633_v55  ;;  %vm790_vm13 = vweird.f32 %v2895_v54  ;;  %v794_v13 = vand.u32 2147483647, %v2895_v54  ;;  %v796_v14 = vand.u32 2147483648, %v2895_v54 }
  0xac   : > { %v2377_v2 = vpop.eup %2376  ;;  %v774_v3 = vadd.f32 %v2369_v29, %v773_v60  ;;  %v1011_v4 = vmul.f32 %v2375_v62, %v2863_v23  ;;  %vm1016_vm15 = vweird.f32 %v2375_v62  ;;  %v1655_v21 = vand.u32 2147483647, %v2898_v58  ;;  %v1389_v60 = vpop.f32.mrf.mxu3 }
  0xad   : > { %v1635_v7 = vadd.f32 %v2371_v33, %v1634_v63  ;;  %v1872_v9 = vmul.f32 %v2377_v2, %v2870_v27  ;;  %vm1877_vm0 = vweird.f32 %v2377_v2  ;;  %v2379_v16 = vpop.eup %2378  ;;  %v1657_v28 = vand.u32 2147483648, %v2898_v58 }
  0xae   : > { %v778_v15 = vsel %vm777_vm11, %v2369_v29, %v774_v3  ;;  %v1012_v8 = vsub.f32 1.0, %v1011_v4  ;;  %v2381_v22 = vpop.eup %2380  ;;  %vm2946_vm2 = vcmp.eq.f32.partialorder %v794_v13, 8.507059e+37  ;;  %v797_v39 = vor.u32 1.1754944e-38, %v796_v14  ;;  %vm1878_vm6 = vmor %vm1876_vm9, %vm1877_vm0 }
  0xaf   : > { %v783_v17 = vsel %vm2874_vm4, %v782_v30, %v778_v15  ;;  %v1639_v18 = vsel %vm1638_vm14, %v2371_v33, %v1635_v7  ;;  %v1873_v19 = vsub.f32 1.0, %v1872_v9  ;;  %v786_v32 = vmul.f32 %v2381_v22, %v2895_v54  ;;  %vm1017_vm4 = vmor %vm1015_vm7, %vm1016_vm15  ;;  %v1344_v9 = vpop.f32.mrf.mxu1  ;;  %v531_v15 = vpop.f32.mrf.mxu2 }
  0xb0   : > { %v1250_v11 = vmul.f32 %v783_v17, %v2816_v42  ;;  %v1644_v25 = vsel %vm2884_vm5, %v1643_v31, %v1639_v18  ;;  %v1013_v26 = vmul.f32 %v2375_v62, %v1012_v8  ;;  %v2383_v42 = vpop.eup %2382  ;;  %vm1651_vm3 = vweird.f32 %v2898_v58 }
  0xb1   : > { %v2111_v29 = vmul.f32 %v1644_v25, %v2819_v43  ;;  %v1874_v30 = vmul.f32 %v2377_v2, %v1873_v19  ;;  %v2953_v31 = vadd.f32 1.0, %v2379_v16  ;;  %v787_v40 = vsub.f32 1.0, %v786_v32 }
  0xb2   : > { %1282 = vst.msk [vmem:[%s2929_s26] sm:$0xff] %vm356_vm1, %v1250_v11  ;;  %v1014_v37 = vadd.f32 %v2375_v62, %v1013_v26  ;;  %vm791_vm5 = vweird.f32 %v2381_v22  ;;  %v1647_v44 = vmul.f32 %v2383_v42, %v2898_v58  ;;  %vm2964_vm8 = vcmp.eq.f32.partialorder %v1655_v21, 8.507059e+37 }
  0xb3   : > { %2143 = vst.msk [vmem:[%s2939_s30] sm:$0xff] %vm356_vm1, %v2111_v29  ;;  %v1875_v43 = vadd.f32 %v2377_v2, %v1874_v30  ;;  %v1658_v47 = vor.u32 1.1754944e-38, %v1657_v28  ;;  %2384 = vrcp.f32 %v2953_v31  ;;  %v788_v51 = vmul.f32 %v2381_v22, %v787_v40  ;;  %vm792_vm9 = vmor %vm790_vm13, %vm791_vm5 }
  0xb4   : > { %v1018_v45 = vsel %vm1017_vm4, %v2375_v62, %v1014_v37  ;;  %v1648_v52 = vsub.f32 1.0, %v1647_v44  ;;  %vm1652_vm7 = vweird.f32 %v2383_v42  ;;  %v1034_v57 = vand.u32 2147483647, %v2953_v31  ;;  %v483_v62 = vpop.f32.mrf.mxu0 }
  0xb5   : > { %v1023_v23 = vsel %vm2906_vm10, %v1022_v0, %v1018_v45  ;;  %v1879_v50 = vsel %vm1878_vm6, %v2377_v2, %v1875_v43  ;;  %v789_v3 = vadd.f32 %v2381_v22, %v788_v51  ;;  %2386 = vpow2.f32 %v2903_v1  ;;  %vm1653_vm10 = vmor %vm1651_vm3, %vm1652_vm7 }
  0xb6   : > { %v1266_v55 = vmul.f32 %v1023_v23, %v2826_v53  ;;  %v1884_v27 = vsel %vm2915_vm12, %v1883_v6, %v1879_v50  ;;  %v1649_v4 = vmul.f32 %v2383_v42, %v1648_v52  ;;  %v1036_v53 = vand.u32 2147483648, %v2953_v31 }
  0xb7   : > { %v2127_v63 = vmul.f32 %v1884_v27, %v2830_v56  ;;  %v678_v0 = vmul.f32 1.442695, %v644_v48  ;;  %v2987_v2 = vadd.f32 %v2811_v38, %v2881_v41  ;;  %v2991_v56 = vadd.f32 %v2806_v36, %v2891_v49 }
  0xb8   : > { %1298 = vst.msk [vmem:[%s2929_s26 + $0x80] sm:$0xff] %vm356_vm1, %v1266_v55  ;;  %v793_v1 = vsel %vm792_vm9, %v2381_v22, %v789_v3  ;;  %v1650_v5 = vadd.f32 %v2383_v42, %v1649_v4  ;;  %v1453_v54 = vmul.f32 %v2801_v35, %v1389_v60  ;;  %v577_v6 = vmul.f32 %v2796_v34, %v483_v62 }
  0xb9   : > { %2159 = vst.msk [vmem:[%s2939_s30 + $0x80] sm:$0xff] %vm356_vm1, %v2127_v63  ;;  %v2385_v7 = vpop.eup %2384  ;;  %v798_v48 = vsel %vm2946_vm2, %v797_v39, %v793_v1  ;;  %2388 = vpow2.f32 %v678_v0  ;;  %v1505_v41 = vsub.f32 0.0, %v2987_v2  ;;  %v660_v49 = vsub.f32 0.0, %v2991_v56 }
  0xba   : > { %v1251_v10 = vmul.f32 %v798_v48, %v2835_v59  ;;  %v1654_v13 = vsel %vm1653_vm10, %v2383_v42, %v1650_v5  ;;  %v1026_v14 = vmul.f32 %v2385_v7, %v2953_v31  ;;  %vm1031_vm11 = vweird.f32 %v2385_v7 }
  0xbb   : > { %v1659_v8 = vsel %vm2964_vm8, %v1658_v47, %v1654_v13  ;;  %v1539_v58 = vmul.f32 1.442695, %v1505_v41  ;;  %v710_v16 = vmul.f32 1.442695, %v660_v49  ;;  %v3009_v17 = vadd.f32 %v2811_v38, %v1453_v54  ;;  %v2387_v18 = vpop.eup %2386 }
  0xbc   : > { %1283 = vst.msk [vmem:[%s2929_s26 + $0x8] sm:$0xff] %vm356_vm1, %v1251_v10  ;;  %v2112_v19 = vmul.f32 %v1659_v8, %v2839_v61  ;;  %v1027_v59 = vsub.f32 1.0, %v1026_v14  ;;  %v3015_v21 = vadd.f32 %v2806_v36, %v577_v6  ;;  %v1438_v22 = vmul.f32 %v2801_v35, %v1344_v9 }
  0xbd   : > { %v3018_v11 = vadd.f32 1.0, %v2387_v18  ;;  %2390 = vpow2.f32 %v1539_v58  ;;  %v1521_v25 = vsub.f32 0.0, %v3009_v17  ;;  %v593_v26 = vmul.f32 %v2796_v34, %v531_v15  ;;  %v1392_v15 = vpop.f32.mrf.mxu3 }
  0xbe   : > { %2144 = vst.msk [vmem:[%s2939_s30 + $0x8] sm:$0xff] %vm356_vm1, %v2112_v19  ;;  %v1028_v28 = vmul.f32 %v2385_v7, %v1027_v59  ;;  %2392 = vpow2.f32 %v710_v16  ;;  %v645_v29 = vsub.f32 0.0, %v3015_v21  ;;  %v3026_v61 = vadd.f32 %v2811_v38, %v1438_v22 }
  0xbf   : > { %v2389_v30 = vpop.eup %2388  ;;  %vm1030_vm12 = vweird.f32 %v2953_v31  ;;  %2394 = vrcp.f32 %v3018_v11  ;;  %v1571_v42 = vmul.f32 1.442695, %v1521_v25  ;;  %v1037_v39 = vor.u32 1.1754944e-38, %v1036_v53 }
  0xc0   : > { %v1029_v32 = vadd.f32 %v2385_v7, %v1028_v28  ;;  %v3030_v33 = vadd.f32 1.0, %v2389_v30  ;;  %v680_v37 = vmul.f32 1.442695, %v645_v29  ;;  %vm1032_vm13 = vmor %vm1030_vm12, %vm1031_vm11  ;;  %v1506_v43 = vsub.f32 0.0, %v3026_v61 }
  0xc1   : > { %v3035_v40 = vadd.f32 %v2806_v36, %v593_v26  ;;  %vm1035_vm14 = vcmp.eq.f32.partialorder %v1034_v57, 8.507059e+37  ;;  %v1895_v46 = vand.u32 2147483647, %v3018_v11  ;;  %v1897_v47 = vand.u32 2147483648, %v3018_v11 }
  0xc2   : > { %v1033_v44 = vsel %vm1032_vm13, %v2385_v7, %v1029_v32  ;;  %2396 = vrcp.f32 %v3030_v33  ;;  %v1541_v52 = vmul.f32 1.442695, %v1506_v43  ;;  %v809_v27 = vand.u32 2147483647, %v3030_v33 }
  0xc3   : > { %v2391_v31 = vpop.eup %2390  ;;  %v1038_v45 = vsel %vm1035_vm14, %v1037_v39, %v1033_v44  ;;  %2398 = vpow2.f32 %v1571_v42  ;;  %v661_v60 = vsub.f32 0.0, %v3035_v40  ;;  %vm1891_vm15 = vweird.f32 %v3018_v11 }
  0xc4   : > { %v2393_v23 = vpop.eup %2392  ;;  %v1267_v50 = vmul.f32 %v1038_v45, %v2849_v12  ;;  %v3041_v51 = vadd.f32 1.0, %v2391_v31  ;;  %2400 = vpow2.f32 %v680_v37  ;;  %vm3052_vm0 = vcmp.eq.f32.partialorder %v1895_v46, 8.507059e+37 }
  0xc5   : > { %v2395_v55 = vpop.eup %2394  ;;  %v3044_v57 = vadd.f32 1.0, %v2393_v23  ;;  %v1898_v63 = vor.u32 1.1754944e-38, %v1897_v47  ;;  %v811_v3 = vand.u32 2147483648, %v3030_v33  ;;  %vm805_vm2 = vweird.f32 %v3030_v33 }
  0xc6   : > { %1299 = vst.msk [vmem:[%s2929_s26 + $0x88] sm:$0xff] %vm356_vm1, %v1267_v50  ;;  %v1887_v62 = vmul.f32 %v2395_v55, %v3018_v11  ;;  %2402 = vrcp.f32 %v3041_v51  ;;  %v712_v0 = vmul.f32 1.442695, %v661_v60  ;;  %vm1892_vm3 = vweird.f32 %v2395_v55 }
  0xc7   : > { %2404 = vrcp.f32 %v3044_v57  ;;  %vm3060_vm4 = vcmp.eq.f32.partialorder %v809_v27, 8.507059e+37  ;;  %v1670_v6 = vand.u32 2147483647, %v3041_v51  ;;  %v1672_v7 = vand.u32 2147483648, %v3041_v51  ;;  %vm1893_vm7 = vmor %vm1891_vm15, %vm1892_vm3 }
  0xc8   : > { %v2397_v4 = vpop.eup %2396  ;;  %v1888_v53 = vsub.f32 1.0, %v1887_v62  ;;  %2406 = vpow2.f32 %v1541_v52  ;;  %v1049_v49 = vand.u32 2147483647, %v3044_v57  ;;  %v1051_v9 = vand.u32 2147483648, %v3044_v57 }
  0xc9   : > { %v2399_v1 = vpop.eup %2398  ;;  %v801_v5 = vmul.f32 %v2397_v4, %v3030_v33  ;;  %v812_v14 = vor.u32 1.1754944e-38, %v811_v3  ;;  %vm1666_vm5 = vweird.f32 %v3041_v51  ;;  %2408 = vpow2.f32 %v712_v0 }
  0xca   : > { %v2401_v48 = vpop.eup %2400  ;;  %v1889_v41 = vmul.f32 %v2395_v55, %v1888_v53  ;;  %v3068_v10 = vadd.f32 1.0, %v2399_v1  ;;  %vm806_vm6 = vweird.f32 %v2397_v4  ;;  %vm1045_vm8 = vweird.f32 %v3044_v57 }
  0xcb   : > { %v802_v13 = vsub.f32 1.0, %v801_v5  ;;  %v3073_v16 = vadd.f32 1.0, %v2401_v48  ;;  %vm3079_vm9 = vcmp.eq.f32.partialorder %v1670_v6, 8.507059e+37  ;;  %v1673_v25 = vor.u32 1.1754944e-38, %v1672_v7  ;;  %vm807_vm11 = vmor %vm805_vm2, %vm806_vm6  ;;  %v1347_v48 = vpop.f32.mrf.mxu1 }
  0xcc   : > { %v2403_v8 = vpop.eup %2402  ;;  %v1890_v58 = vadd.f32 %v2395_v55, %v1889_v41  ;;  %2410 = vrcp.f32 %v3068_v10  ;;  %v1912_v26 = vand.u32 2147483648, %v3068_v10  ;;  %vm3085_vm10 = vcmp.eq.f32.partialorder %v1049_v49, 8.507059e+37 }
  0xcd   : > { %v2405_v18 = vpop.eup %2404  ;;  %v803_v19 = vmul.f32 %v2397_v4, %v802_v13  ;;  %v1662_v59 = vmul.f32 %v2403_v8, %v3041_v51  ;;  %v1052_v11 = vor.u32 1.1754944e-38, %v1051_v9  ;;  %v3090_v42 = vmul.f32 %v2801_v35, %v1392_v15  ;;  %v486_v51 = vpop.f32.mrf.mxu0 }
  0xce   : > { %v2407_v28 = vpop.eup %2406  ;;  %v1894_v29 = vsel %vm1893_vm7, %v2395_v55, %v1890_v58  ;;  %v1041_v30 = vmul.f32 %v2405_v18, %v3044_v57  ;;  %v1910_v44 = vand.u32 2147483647, %v3068_v10  ;;  %vm1667_vm12 = vweird.f32 %v2403_v8 }
  0xcf   : > { %v1899_v37 = vsel %vm3052_vm0, %v1898_v63, %v1894_v29  ;;  %v804_v39 = vadd.f32 %v2397_v4, %v803_v19  ;;  %v1663_v43 = vsub.f32 1.0, %v1662_v59  ;;  %2412 = vrcp.f32 %v3073_v16  ;;  %v2409_v46 = vpop.eup %2408  ;;  %vm1668_vm0 = vmor %vm1666_vm5, %vm1667_vm12 }
  0xd0   : > { %v2128_v31 = vmul.f32 %v1899_v37, %v2860_v20  ;;  %v1042_v45 = vsub.f32 1.0, %v1041_v30  ;;  %vm1046_vm13 = vweird.f32 %v2405_v18  ;;  %vm1906_vm14 = vweird.f32 %v3068_v10 }
  0xd1   : > { %v808_v47 = vsel %vm807_vm11, %v2397_v4, %v804_v39  ;;  %v1664_v23 = vmul.f32 %v2403_v8, %v1663_v43  ;;  %v1913_v50 = vor.u32 1.1754944e-38, %v1912_v26  ;;  %v3105_v55 = vadd.f32 1.0, %v2407_v28  ;;  %vm1047_vm3 = vmor %vm1045_vm8, %vm1046_vm13  ;;  %v534_v26 = vpop.f32.mrf.mxu2 }
  0xd2   : > { %v2411_v52 = vpop.eup %2410  ;;  %2160 = vst.msk [vmem:[%s2939_s30 + $0x88] sm:$0xff] %vm356_vm1, %v2128_v31  ;;  %v813_v20 = vsel %vm3060_vm4, %v812_v14, %v808_v47  ;;  %v1043_v33 = vmul.f32 %v2405_v18, %v1042_v45  ;;  %v3107_v27 = vadd.f32 1.0, %v2409_v46  ;;  %vm3111_vm15 = vcmp.eq.f32.partialorder %v1910_v44, 8.507059e+37  ;;  %v1395_v46 = vpop.f32.mrf.mxu3 }
  0xd3   : > { %v1252_v60 = vmul.f32 %v813_v20, %v2866_v24  ;;  %v1665_v62 = vadd.f32 %v2403_v8, %v1664_v23  ;;  %v1902_v12 = vmul.f32 %v2411_v52, %v3068_v10  ;;  %v824_v3 = vand.u32 2147483647, %v3073_v16  ;;  %v1350_v63 = vpop.f32.mrf.mxu1 }
  0xd4   : > { %v1044_v4 = vadd.f32 %v2405_v18, %v1043_v33  ;;  %vm820_vm2 = vweird.f32 %v3073_v16  ;;  %v826_v53 = vand.u32 2147483648, %v3073_v16  ;;  %2414 = vrcp.f32 %v3105_v55 }
  0xd5   : > { %1284 = vst.msk [vmem:[%s2929_s26 + $0x10] sm:$0xff] %vm356_vm1, %v1252_v60  ;;  %v1669_v24 = vsel %vm1668_vm0, %v2403_v8, %v1665_v62  ;;  %v1903_v0 = vsub.f32 1.0, %v1902_v12  ;;  %vm1907_vm4 = vweird.f32 %v2411_v52  ;;  %v1685_v1 = vand.u32 2147483647, %v3105_v55  ;;  %v2413_v5 = vpop.eup %2412  ;;  %v489_v60 = vpop.f32.mrf.mxu0 }
  0xd6   : > { %v1674_v54 = vsel %vm3079_vm9, %v1673_v25, %v1669_v24  ;;  %v1048_v6 = vsel %vm1047_vm3, %v2405_v18, %v1044_v4  ;;  %v1687_v7 = vand.u32 2147483648, %v3105_v55  ;;  %2416 = vrcp.f32 %v3107_v27  ;;  %vm1908_vm7 = vmor %vm1906_vm14, %vm1907_vm4 }
  0xd7   : > { %v2113_v57 = vmul.f32 %v1674_v54, %v2987_v2  ;;  %v1053_v41 = vsel %vm3085_vm10, %v1052_v11, %v1048_v6  ;;  %v1904_v49 = vmul.f32 %v2411_v52, %v1903_v0  ;;  %v816_v9 = vmul.f32 %v2413_v5, %v3073_v16 }
  0xd8   : > { %vm3136_vm5 = vcmp.eq.f32.partialorder %v824_v3, 8.507059e+37  ;;  %v1268_v14 = vmul.f32 %v1053_v41, %v2991_v56  ;;  %vm821_vm6 = vweird.f32 %v2413_v5  ;;  %v827_v15 = vor.u32 1.1754944e-38, %v826_v53 }
  0xd9   : > { %vm1681_vm8 = vweird.f32 %v3105_v55  ;;  %2145 = vst.msk [vmem:[%s2939_s30 + $0x10] sm:$0xff] %vm356_vm1, %v2113_v57  ;;  %v1905_v8 = vadd.f32 %v2411_v52, %v1904_v49  ;;  %v817_v2 = vsub.f32 1.0, %v816_v9  ;;  %v1688_v58 = vor.u32 1.1754944e-38, %v1687_v7  ;;  %vm822_vm13 = vmor %vm820_vm2, %vm821_vm6  ;;  %v537_v41 = vpop.f32.mrf.mxu2 }
  0xda   : > { %v1064_v18 = vand.u32 2147483647, %v3107_v27  ;;  %v2415_v19 = vpop.eup %2414  ;;  %1300 = vst.msk [vmem:[%s2929_s26 + $0x90] sm:$0xff] %vm356_vm1, %v1268_v14  ;;  %v1066_v56 = vand.u32 2147483648, %v3107_v27  ;;  %v3153_v59 = vadd.f32 %v2811_v38, %v3090_v42  ;;  %v578_v22 = vmul.f32 %v2796_v34, %v486_v51 }
  0xdb   : > { %v1439_v25 = vmul.f32 %v2801_v35, %v1347_v48  ;;  %v1909_v28 = vsel %vm1908_vm7, %v2411_v52, %v1905_v8  ;;  %v818_v29 = vmul.f32 %v2413_v5, %v817_v2  ;;  %v1677_v30 = vmul.f32 %v2415_v19, %v3105_v55 }
  0xdc   : > { %vm3158_vm9 = vcmp.eq.f32.partialorder %v1685_v1, 8.507059e+37  ;;  %vm1060_vm10 = vweird.f32 %v3107_v27  ;;  %v2417_v10 = vpop.eup %2416  ;;  %v1914_v11 = vsel %vm3111_vm15, %v1913_v50, %v1909_v28  ;;  %vm1682_vm11 = vweird.f32 %v2415_v19 }
  0xdd   : > { %v1067_v42 = vor.u32 1.1754944e-38, %v1066_v56  ;;  %v1522_v37 = vsub.f32 0.0, %v3153_v59  ;;  %v2129_v39 = vmul.f32 %v1914_v11, %v3009_v17  ;;  %v819_v43 = vadd.f32 %v2413_v5, %v818_v29  ;;  %vm1683_vm15 = vmor %vm1681_vm8, %vm1682_vm11 }
  0xde   : > { %v1678_v44 = vsub.f32 1.0, %v1677_v30  ;;  %v1056_v31 = vmul.f32 %v2417_v10, %v3107_v27  ;;  %vm3168_vm12 = vcmp.eq.f32.partialorder %v1064_v18, 8.507059e+37  ;;  %vm1061_vm14 = vweird.f32 %v2417_v10 }
  0xdf   : > { %v1573_v47 = vmul.f32 1.442695, %v1522_v37  ;;  %v3176_v23 = vadd.f32 %v2806_v36, %v578_v22  ;;  %v3179_v17 = vadd.f32 %v2811_v38, %v1439_v25  ;;  %2161 = vst.msk [vmem:[%s2939_s30 + $0x90] sm:$0xff] %vm356_vm1, %v2129_v39  ;;  %v823_v50 = vsel %vm822_vm13, %v2413_v5, %v819_v43  ;;  %vm1062_vm0 = vmor %vm1060_vm10, %vm1061_vm14 }
  0xe0   : > { %v1679_v52 = vmul.f32 %v2415_v19, %v1678_v44  ;;  %v1057_v20 = vsub.f32 1.0, %v1056_v31  ;;  %v594_v33 = vmul.f32 %v2796_v34, %v534_v26  ;;  %v828_v16 = vsel %vm3136_vm5, %v827_v15, %v823_v50 }
  0xe1   : > { %2418 = vpow2.f32 %v1573_v47  ;;  %v646_v62 = vsub.f32 0.0, %v3176_v23  ;;  %v1507_v12 = vsub.f32 0.0, %v3179_v17  ;;  %v1253_v3 = vmul.f32 %v828_v16, %v3015_v21 }
  0xe2   : > { %v1680_v4 = vadd.f32 %v2415_v19, %v1679_v52  ;;  %v1058_v53 = vmul.f32 %v2417_v10, %v1057_v20  ;;  %v3190_v24 = vadd.f32 %v2806_v36, %v594_v33  ;;  %v1455_v51 = vmul.f32 %v2801_v35, %v1395_v46 }
  0xe3   : > { %v682_v0 = vmul.f32 1.442695, %v646_v62  ;;  %v1543_v1 = vmul.f32 1.442695, %v1507_v12  ;;  %v579_v5 = vmul.f32 %v2796_v34, %v489_v60  ;;  %1285 = vst.msk [vmem:[%s2929_s26 + $0x18] sm:$0xff] %vm356_vm1, %v1253_v3  ;;  %v1440_v7 = vmul.f32 %v2801_v35, %v1350_v63 }
  0xe4   : > { %v1684_v54 = vsel %vm1683_vm15, %v2415_v19, %v1680_v4  ;;  %v1059_v6 = vadd.f32 %v2417_v10, %v1058_v53  ;;  %v662_v21 = vsub.f32 0.0, %v3190_v24  ;;  %v3207_v55 = vadd.f32 %v2811_v38, %v1455_v51  ;;  %v1398_v19 = vpop.f32.mrf.mxu3 }
  0xe5   : > { %v1689_v48 = vsel %vm3158_vm9, %v1688_v58, %v1684_v54  ;;  %2420 = vpow2.f32 %v682_v0  ;;  %v3210_v57 = vadd.f32 %v2806_v36, %v579_v5  ;;  %v3218_v2 = vadd.f32 %v2811_v38, %v1440_v7 }
  0xe6   : > { %v2114_v49 = vmul.f32 %v1689_v48, %v3026_v61  ;;  %v1063_v9 = vsel %vm1062_vm0, %v2417_v10, %v1059_v6  ;;  %2422 = vpow2.f32 %v1543_v1  ;;  %v714_v13 = vmul.f32 1.442695, %v662_v21 }
  0xe7   : > { %v2419_v14 = vpop.eup %2418  ;;  %v1068_v15 = vsel %vm3168_vm12, %v1067_v42, %v1063_v9  ;;  %v1523_v27 = vsub.f32 0.0, %v3207_v55  ;;  %v647_v8 = vsub.f32 0.0, %v3210_v57  ;;  %v595_v18 = vmul.f32 %v2796_v34, %v537_v41 }
  0xe8   : > { %2146 = vst.msk [vmem:[%s2939_s30 + $0x18] sm:$0xff] %vm356_vm1, %v2114_v49  ;;  %v1269_v58 = vmul.f32 %v1068_v15, %v3035_v40  ;;  %v3223_v61 = vadd.f32 1.0, %v2419_v14  ;;  %2424 = vpow2.f32 %v714_v13  ;;  %v1508_v25 = vsub.f32 0.0, %v3218_v2 }
  0xe9   : > { %v1575_v56 = vmul.f32 1.442695, %v1523_v27  ;;  %v684_v22 = vmul.f32 1.442695, %v647_v8  ;;  %v3231_v29 = vadd.f32 %v2806_v36, %v595_v18  ;;  %v1456_v40 = vmul.f32 %v2801_v35, %v1398_v19 }
  0xea   : > { %1301 = vst.msk [vmem:[%s2929_s26 + $0x98] sm:$0xff] %vm356_vm1, %v1269_v58  ;;  %2426 = vrcp.f32 %v3223_v61  ;;  %v1545_v28 = vmul.f32 1.442695, %v1508_v25  ;;  %v1925_v34 = vand.u32 2147483647, %v3223_v61  ;;  %v1927_v10 = vand.u32 2147483648, %v3223_v61 }
  0xeb   : > { %v2421_v26 = vpop.eup %2420  ;;  %2428 = vpow2.f32 %v1575_v56  ;;  %v663_v37 = vsub.f32 0.0, %v3231_v29  ;;  %v3244_v35 = vadd.f32 %v2811_v38, %v1456_v40  ;;  %vm1921_vm2 = vweird.f32 %v3223_v61 }
  0xec   : > { %v2423_v30 = vpop.eup %2422  ;;  %v3234_v32 = vadd.f32 1.0, %v2421_v26  ;;  %2430 = vpow2.f32 %v684_v22  ;;  %vm3251_vm3 = vcmp.eq.f32.partialorder %v1925_v34, 8.507059e+37  ;;  %v1928_v46 = vor.u32 1.1754944e-38, %v1927_v10 }
  0xed   : > { %v3238_v11 = vadd.f32 1.0, %v2423_v30  ;;  %2432 = vpow2.f32 %v1545_v28  ;;  %v716_v33 = vmul.f32 1.442695, %v663_v37  ;;  %v1524_v63 = vsub.f32 0.0, %v3244_v35 }
  0xee   : > { %v2425_v42 = vpop.eup %2424  ;;  %2434 = vrcp.f32 %v3234_v32  ;;  %v841_v39 = vand.u32 2147483648, %v3234_v32  ;;  %v839_v47 = vand.u32 2147483647, %v3234_v32  ;;  %vm835_vm5 = vweird.f32 %v3234_v32 }
  0xef   : > { %2436 = vrcp.f32 %v3238_v11  ;;  %v3248_v43 = vadd.f32 1.0, %v2425_v42  ;;  %v1700_v38 = vand.u32 2147483647, %v3238_v11  ;;  %v1702_v52 = vand.u32 2147483648, %v3238_v11 }
  0xf0   : > { %v2427_v36 = vpop.eup %2426  ;;  %v842_v4 = vor.u32 1.1754944e-38, %v841_v39  ;;  %vm1696_vm6 = vweird.f32 %v3238_v11  ;;  %vm3268_vm8 = vcmp.eq.f32.partialorder %v839_v47, 8.507059e+37  ;;  %v1577_v15 = vmul.f32 1.442695, %v1524_v63  ;;  %v492_v39 = vpop.f32.mrf.mxu0 }
  0xf1   : > { %v2429_v44 = vpop.eup %2428  ;;  %v1917_v31 = vmul.f32 %v2427_v36, %v3223_v61  ;;  %2438 = vrcp.f32 %v3248_v43  ;;  %v1081_v20 = vand.u32 2147483648, %v3248_v43  ;;  %vm1922_vm4 = vweird.f32 %v2427_v36  ;;  %v1353_v63 = vpop.f32.mrf.mxu1 }
  0xf2   : > { %v2431_v50 = vpop.eup %2430  ;;  %v3260_v62 = vadd.f32 1.0, %v2429_v44  ;;  %v1079_v5 = vand.u32 2147483647, %v3248_v43  ;;  %vm3275_vm7 = vcmp.eq.f32.partialorder %v1700_v38, 8.507059e+37  ;;  %v1703_v21 = vor.u32 1.1754944e-38, %v1702_v52  ;;  %vm1923_vm10 = vmor %vm1921_vm2, %vm1922_vm4 }
  0xf3   : > { %v2433_v60 = vpop.eup %2432  ;;  %v1918_v16 = vsub.f32 1.0, %v1917_v31  ;;  %v3262_v12 = vadd.f32 1.0, %v2431_v50  ;;  %v3279_v7 = vor.u32 1.1754944e-38, %v1081_v20  ;;  %vm1075_vm9 = vweird.f32 %v3248_v43 }
  0xf4   : > { %v2435_v3 = vpop.eup %2434  ;;  %2440 = vrcp.f32 %v3260_v62  ;;  %v3283_v49 = vadd.f32 1.0, %v2433_v60  ;;  %v1940_v14 = vand.u32 2147483647, %v3260_v62  ;;  %vm3290_vm12 = vcmp.eq.f32.partialorder %v1079_v5, 8.507059e+37 }
  0xf5   : > { %v2437_v53 = vpop.eup %2436  ;;  %v1919_v0 = vmul.f32 %v2427_v36, %v1918_v16  ;;  %v831_v1 = vmul.f32 %v2435_v3, %v3234_v32  ;;  %2442 = vpow2.f32 %v716_v33  ;;  %vm836_vm11 = vweird.f32 %v2435_v3 }
  0xf6   : > { %v1692_v54 = vmul.f32 %v2437_v53, %v3238_v11  ;;  %2444 = vrcp.f32 %v3262_v12  ;;  %v1942_v19 = vand.u32 2147483648, %v3260_v62  ;;  %vm1697_vm13 = vweird.f32 %v2437_v53  ;;  %vm837_vm0 = vmor %vm835_vm5, %vm836_vm11 }
  0xf7   : > { %v1920_v48 = vadd.f32 %v2427_v36, %v1919_v0  ;;  %v832_v41 = vsub.f32 1.0, %v831_v1  ;;  %v2439_v9 = vpop.eup %2438  ;;  %vm1936_vm14 = vweird.f32 %v3260_v62  ;;  %vm850_vm15 = vweird.f32 %v3262_v12 }
  0xf8   : > { %v1693_v13 = vsub.f32 1.0, %v1692_v54  ;;  %v1071_v58 = vmul.f32 %v2439_v9, %v3248_v43  ;;  %vm3304_vm2 = vcmp.eq.f32.partialorder %v1940_v14, 8.507059e+37  ;;  %v854_v42 = vand.u32 2147483647, %v3262_v12  ;;  %v495_v18 = vpop.f32.mrf.mxu0 }
  0xf9   : > { %v1924_v27 = vsel %vm1923_vm10, %v2427_v36, %v1920_v48  ;;  %v833_v8 = vmul.f32 %v2435_v3, %v832_v41  ;;  %2446 = vrcp.f32 %v3283_v49  ;;  %vm1076_vm4 = vweird.f32 %v2439_v9  ;;  %v3357_v41 = vld [vmem:[%s4320_s3] ss:$0 sm:$0xff] }
  0xfa   : > { %v1929_v56 = vsel %vm3251_vm3, %v1928_v46, %v1924_v27  ;;  %v1694_v61 = vmul.f32 %v2437_v53, %v1693_v13  ;;  %v2441_v22 = vpop.eup %2440  ;;  %v1072_v28 = vsub.f32 1.0, %v1071_v58  ;;  %vm1698_vm3 = vmor %vm1696_vm6, %vm1697_vm13  ;;  %v1943_v36 = vor.u32 1.1754944e-38, %v1942_v19  ;;  %v1401_v58 = vpop.f32.mrf.mxu3 }
  0xfb   : > { %v2130_v25 = vmul.f32 %v1929_v56, %v3153_v59  ;;  %v834_v26 = vadd.f32 %v2435_v3, %v833_v8  ;;  %v2443_v40 = vpop.eup %2442  ;;  %v1932_v34 = vmul.f32 %v2441_v22, %v3260_v62  ;;  %v856_v50 = vand.u32 2147483648, %v3262_v12  ;;  %vm1077_vm5 = vmor %vm1075_vm9, %vm1076_vm4 }
  0xfc   : > { %v1695_v30 = vadd.f32 %v2437_v53, %v1694_v61  ;;  %v2445_v59 = vpop.eup %2444  ;;  %v1073_v32 = vmul.f32 %v2439_v9, %v1072_v28  ;;  %vm1937_vm6 = vweird.f32 %v2441_v22  ;;  %v3331_v16 = vadd.f32 1.0, %v2443_v40  ;;  %v3378_v61 = vld [vmem:[%s4321_s4] ss:$0 sm:$0xff] }
  0xfd   : > { %2162 = vst.msk [vmem:[%s2939_s30 + $0x98] sm:$0xff] %vm356_vm1, %v2130_v25  ;;  %v838_v37 = vsel %vm837_vm0, %v2435_v3, %v834_v26  ;;  %v1933_v45 = vsub.f32 1.0, %v1932_v34  ;;  %v846_v46 = vmul.f32 %v2445_v59, %v3262_v12  ;;  %2448 = vpow2.f32 %v1577_v15  ;;  %vm1938_vm9 = vmor %vm1936_vm14, %vm1937_vm6  ;;  %v3363_v12 = vld [vmem:[%s4322_s5] ss:$0 sm:$0xff] }
  0xfe   : > { %v843_v44 = vsel %vm3268_vm8, %v842_v4, %v838_v37  ;;  %v1699_v31 = vsel %vm1698_vm3, %v2437_v53, %v1695_v30  ;;  %v1074_v11 = vadd.f32 %v2439_v9, %v1073_v32  ;;  %vm3327_vm8 = vcmp.eq.f32.partialorder %v854_v42, 8.507059e+37  ;;  %v540_v53 = vpop.f32.mrf.mxu2  ;;  %v3386_v25 = vld [vmem:[%s4323_s6] ss:$0 sm:$0xff] }
  0xff   : > { %v1254_v47 = vmul.f32 %v843_v44, %v3176_v23  ;;  %v1704_v38 = vsel %vm3275_vm7, %v1703_v21, %v1699_v31  ;;  %v1934_v20 = vmul.f32 %v2441_v22, %v1933_v45  ;;  %v847_v33 = vsub.f32 1.0, %v846_v46  ;;  %v2447_v3 = vpop.eup %2446 }
 0x100   : > { %v2115_v52 = vmul.f32 %v1704_v38, %v3179_v17  ;;  %v1078_v60 = vsel %vm1077_vm5, %v2439_v9, %v1074_v11  ;;  %vm851_vm7 = vweird.f32 %v2445_v59  ;;  %v857_v1 = vor.u32 1.1754944e-38, %v856_v50 }
 0x101   : > { %1286 = vst.msk [vmem:[%s2929_s26 + $0x20] sm:$0xff] %vm356_vm1, %v1254_v47  ;;  %v1083_v17 = vsel %vm3290_vm12, %v3279_v7, %v1078_v60  ;;  %v1935_v43 = vadd.f32 %v2441_v22, %v1934_v20  ;;  %v848_v4 = vmul.f32 %v2445_v59, %v847_v33  ;;  %v1707_v51 = vmul.f32 %v2447_v3, %v3283_v49  ;;  %vm852_vm11 = vmor %vm850_vm15, %vm851_vm7 }
 0x102   : > { %2147 = vst.msk [vmem:[%s2939_s30 + $0x20] sm:$0xff] %vm356_vm1, %v2115_v52  ;;  %v1270_v0 = vmul.f32 %v1083_v17, %v3190_v24  ;;  %vm1711_vm10 = vweird.f32 %v3283_v49  ;;  %v1715_v6 = vand.u32 2147483647, %v3283_v49  ;;  %2450 = vrcp.f32 %v3331_v16 }
 0x103   : > { %v1939_v5 = vsel %vm1938_vm9, %v2441_v22, %v1935_v43  ;;  %v849_v54 = vadd.f32 %v2445_v59, %v848_v4  ;;  %v1708_v62 = vsub.f32 1.0, %v1707_v51  ;;  %vm1712_vm12 = vweird.f32 %v2447_v3  ;;  %v2449_v14 = vpop.eup %2448 }
 0x104   : > { %1302 = vst.msk [vmem:[%s2929_s26 + $0xa0] sm:$0xff] %vm356_vm1, %v1270_v0  ;;  %v1944_v24 = vsel %vm3304_vm2, %v1943_v36, %v1939_v5  ;;  %v1717_v21 = vand.u32 2147483648, %v3283_v49  ;;  %v580_v9 = vmul.f32 %v3357_v41, %v492_v39  ;;  %v1441_v13 = vmul.f32 %v3363_v12, %v1353_v63  ;;  %vm1713_vm14 = vmor %vm1711_vm10, %vm1712_vm12  ;;  %v1356_v39 = vpop.f32.mrf.mxu1 }
 0x105   : > { %v2131_v7 = vmul.f32 %v1944_v24, %v3207_v55  ;;  %v853_v48 = vsel %vm852_vm11, %v2445_v59, %v849_v54  ;;  %v1709_v55 = vmul.f32 %v2447_v3, %v1708_v62  ;;  %v1094_v27 = vand.u32 2147483647, %v3331_v16  ;;  %v1404_v62 = vpop.f32.mrf.mxu3 }
 0x106   : > { %v858_v15 = vsel %vm3327_vm8, %v857_v1, %v853_v48  ;;  %v1096_v8 = vand.u32 2147483648, %v3331_v16  ;;  %v3373_v56 = vadd.f32 1.0, %v2449_v14  ;;  %v3381_v22 = vadd.f32 %v3378_v61, %v580_v9  ;;  %v543_v46 = vpop.f32.mrf.mxu2 }
 0x107   : > { %2163 = vst.msk [vmem:[%s2939_s30 + $0xa0] sm:$0xff] %vm356_vm1, %v2131_v7  ;;  %v1255_v19 = vmul.f32 %v858_v15, %v3210_v57  ;;  %v3389_v26 = vadd.f32 %v3386_v25, %v1441_v13  ;;  %v1710_v28 = vadd.f32 %v2447_v3, %v1709_v55  ;;  %vm3391_vm13 = vcmp.eq.f32.partialorder %v1715_v6, 8.507059e+37 }
 0x108   : > { %v1718_v40 = vor.u32 1.1754944e-38, %v1717_v21  ;;  %v596_v30 = vmul.f32 %v3357_v41, %v540_v53  ;;  %v2451_v34 = vpop.eup %2450  ;;  %vm1090_vm15 = vweird.f32 %v3331_v16  ;;  %2452 = vrcp.f32 %v3373_v56 }
 0x109   : > { %1287 = vst.msk [vmem:[%s2929_s26 + $0x28] sm:$0xff] %vm356_vm1, %v1255_v19  ;;  %v1457_v10 = vmul.f32 %v3363_v12, %v1401_v58  ;;  %v581_v42 = vmul.f32 %v3357_v41, %v495_v18  ;;  %v1714_v59 = vsel %vm1713_vm14, %v2447_v3, %v1710_v28  ;;  %v1086_v37 = vmul.f32 %v2451_v34, %v3331_v16 }
 0x10a   : > { %vm3406_vm0 = vcmp.eq.f32.partialorder %v1094_v27, 8.507059e+37  ;;  %v1097_v36 = vor.u32 1.1754944e-38, %v1096_v8  ;;  %v648_v49 = vsub.f32 0.0, %v3381_v22  ;;  %v1719_v44 = vsel %vm3391_vm13, %v1718_v40, %v1714_v59 }
 0x10b   : > { %vm1091_vm2 = vweird.f32 %v2451_v34  ;;  %v1955_v31 = vand.u32 2147483647, %v3373_v56  ;;  %v1509_v45 = vsub.f32 0.0, %v3389_v26  ;;  %v2116_v47 = vmul.f32 %v1719_v44, %v3218_v2 }
 0x10c   : > { %v1087_v38 = vsub.f32 1.0, %v1086_v37  ;;  %v686_v11 = vmul.f32 1.442695, %v648_v49  ;;  %v3417_v50 = vadd.f32 %v3378_v61, %v596_v30  ;;  %v3420_v20 = vadd.f32 %v3386_v25, %v1457_v10  ;;  %vm1092_vm3 = vmor %vm1090_vm15, %vm1091_vm2  ;;  %v498_v30 = vpop.f32.mrf.mxu0 }
 0x10d   : > { %v1547_v52 = vmul.f32 1.442695, %v1509_v45  ;;  %v3423_v33 = vadd.f32 %v3378_v61, %v581_v42  ;;  %v1442_v60 = vmul.f32 %v3363_v12, %v1356_v39  ;;  %2148 = vst.msk [vmem:[%s2939_s30 + $0x28] sm:$0xff] %vm356_vm1, %v2116_v47  ;;  %v597_v63 = vmul.f32 %v3357_v41, %v543_v46  ;;  %v1359_v42 = vpop.f32.mrf.mxu1 }
 0x10e   : > { %v1088_v23 = vmul.f32 %v2451_v34, %v1087_v38  ;;  %2454 = vpow2.f32 %v686_v11  ;;  %v664_v2 = vsub.f32 0.0, %v3417_v50  ;;  %v2453_v3 = vpop.eup %2452  ;;  %v1525_v17 = vsub.f32 0.0, %v3420_v20 }
 0x10f   : > { %2456 = vpow2.f32 %v1547_v52  ;;  %v649_v43 = vsub.f32 0.0, %v3423_v33  ;;  %v3433_v4 = vadd.f32 %v3386_v25, %v1442_v60  ;;  %v1947_v0 = vmul.f32 %v2453_v3, %v3373_v56 }
 0x110   : > { %v1089_v53 = vadd.f32 %v2451_v34, %v1088_v23  ;;  %v1957_v1 = vand.u32 2147483648, %v3373_v56  ;;  %v718_v51 = vmul.f32 1.442695, %v664_v2  ;;  %v1579_v5 = vmul.f32 1.442695, %v1525_v17 }
 0x111   : > { %v688_v54 = vmul.f32 1.442695, %v649_v43  ;;  %v1510_v6 = vsub.f32 0.0, %v3433_v4  ;;  %v3442_v24 = vadd.f32 %v3378_v61, %v597_v63  ;;  %v1948_v7 = vsub.f32 1.0, %v1947_v0 }
 0x112   : > { %v1093_v21 = vsel %vm1092_vm3, %v2451_v34, %v1089_v53  ;;  %vm1952_vm4 = vweird.f32 %v2453_v3  ;;  %2458 = vpow2.f32 %v718_v51  ;;  %v1458_v55 = vmul.f32 %v3363_v12, %v1404_v62 }
 0x113   : > { %v1098_v48 = vsel %vm3406_vm0, %v1097_v36, %v1093_v21  ;;  %2460 = vpow2.f32 %v1579_v5  ;;  %v1549_v9 = vmul.f32 1.442695, %v1510_v6  ;;  %v665_v16 = vsub.f32 0.0, %v3442_v24 }
 0x114   : > { %v2455_v13 = vpop.eup %2454  ;;  %v1271_v14 = vmul.f32 %v1098_v48, %v3231_v29  ;;  %v1949_v15 = vmul.f32 %v2453_v3, %v1948_v7  ;;  %2462 = vpow2.f32 %v688_v54  ;;  %vm1951_vm5 = vweird.f32 %v3373_v56 }
 0x115   : > { %v2457_v27 = vpop.eup %2456  ;;  %v3449_v8 = vadd.f32 1.0, %v2455_v13  ;;  %2464 = vpow2.f32 %v1549_v9  ;;  %vm1953_vm6 = vmor %vm1951_vm5, %vm1952_vm4  ;;  %v1958_v19 = vor.u32 1.1754944e-38, %v1957_v1  ;;  %v720_v29 = vmul.f32 1.442695, %v665_v16 }
 0x116   : > { %1303 = vst.msk [vmem:[%s2929_s26 + $0xa8] sm:$0xff] %vm356_vm1, %v1271_v14  ;;  %v1950_v58 = vadd.f32 %v2453_v3, %v1949_v15  ;;  %v3454_v18 = vadd.f32 1.0, %v2457_v27  ;;  %vm1956_vm8 = vcmp.eq.f32.partialorder %v1955_v31, 8.507059e+37  ;;  %v3460_v40 = vadd.f32 %v3386_v25, %v1458_v55 }
 0x117   : > { %2466 = vrcp.f32 %v3449_v8  ;;  %v869_v10 = vand.u32 2147483647, %v3449_v8  ;;  %v871_v32 = vand.u32 2147483648, %v3449_v8  ;;  %v3472_v31 = vmul.f32 %v3357_v41, %v498_v30 }
 0x118   : > { %v2459_v28 = vpop.eup %2458  ;;  %v1954_v57 = vsel %vm1953_vm6, %v2453_v3, %v1950_v58  ;;  %2468 = vrcp.f32 %v3454_v18  ;;  %v1730_v39 = vand.u32 2147483647, %v3454_v18  ;;  %v1732_v44 = vand.u32 2147483648, %v3454_v18 }
 0x119   : > { %v2461_v56 = vpop.eup %2460  ;;  %v1959_v34 = vsel %vm1956_vm8, %v1958_v19, %v1954_v57  ;;  %v3465_v36 = vadd.f32 1.0, %v2459_v28  ;;  %2470 = vpow2.f32 %v720_v29  ;;  %v1526_v46 = vsub.f32 0.0, %v3460_v40 }
 0x11a   : > { %v2463_v59 = vpop.eup %2462  ;;  %v2132_v37 = vmul.f32 %v1959_v34, %v3244_v35  ;;  %v3467_v49 = vadd.f32 1.0, %v2461_v56  ;;  %v3481_v47 = vmul.f32 %v3363_v12, %v1359_v42  ;;  %vm865_vm7 = vweird.f32 %v3449_v8 }
 0x11b   : > { %v2465_v45 = vpop.eup %2464  ;;  %2472 = vrcp.f32 %v3465_v36  ;;  %v3477_v35 = vadd.f32 1.0, %v2463_v59  ;;  %vm1726_vm9 = vweird.f32 %v3454_v18  ;;  %v1111_v11 = vand.u32 2147483648, %v3465_v36 }
 0x11c   : > { %2164 = vst.msk [vmem:[%s2939_s30 + $0xa8] sm:$0xff] %vm356_vm1, %v2132_v37  ;;  %2474 = vrcp.f32 %v3467_v49  ;;  %vm3488_vm10 = vcmp.eq.f32.partialorder %v869_v10, 8.507059e+37  ;;  %v872_v2 = vor.u32 1.1754944e-38, %v871_v32  ;;  %v1972_v63 = vand.u32 2147483648, %v3467_v49 }
 0x11d   : > { %v2467_v38 = vpop.eup %2466  ;;  %vm3494_vm11 = vcmp.eq.f32.partialorder %v1730_v39, 8.507059e+37  ;;  %v1733_v43 = vor.u32 1.1754944e-38, %v1732_v44  ;;  %v1109_v53 = vand.u32 2147483647, %v3465_v36  ;;  %v1970_v1 = vand.u32 2147483647, %v3467_v49 }
 0x11e   : > { %v2469_v52 = vpop.eup %2468  ;;  %v861_v60 = vmul.f32 %v2467_v38, %v3449_v8  ;;  %2476 = vrcp.f32 %v3477_v35  ;;  %v1581_v51 = vmul.f32 1.442695, %v1526_v46  ;;  %vm866_vm12 = vweird.f32 %v2467_v38 }
 0x11f   : > { %v1722_v3 = vmul.f32 %v2469_v52, %v3454_v18  ;;  %v2471_v5 = vpop.eup %2470  ;;  %vm1105_vm13 = vweird.f32 %v3465_v36  ;;  %v1112_v6 = vor.u32 1.1754944e-38, %v1111_v11  ;;  %v3502_v62 = vadd.f32 1.0, %v2465_v45  ;;  %vm867_vm4 = vmor %vm865_vm7, %vm866_vm12 }
 0x120   : > { %v862_v0 = vsub.f32 1.0, %v861_v60  ;;  %vm1727_vm14 = vweird.f32 %v2469_v52  ;;  %vm1966_vm15 = vweird.f32 %v3467_v49  ;;  %v1973_v48 = vor.u32 1.1754944e-38, %v1972_v63 }
 0x121   : > { %v1723_v54 = vsub.f32 1.0, %v1722_v3  ;;  %v2473_v21 = vpop.eup %2472  ;;  %v3505_v9 = vadd.f32 1.0, %v2471_v5  ;;  %vm3508_vm0 = vcmp.eq.f32.partialorder %v1109_v53, 8.507059e+37  ;;  %vm880_vm2 = vweird.f32 %v3477_v35  ;;  %vm1728_vm6 = vmor %vm1726_vm9, %vm1727_vm14 }
 0x122   : > { %v863_v7 = vmul.f32 %v2467_v38, %v862_v0  ;;  %v2475_v16 = vpop.eup %2474  ;;  %v1101_v14 = vmul.f32 %v2473_v21, %v3465_v36  ;;  %v884_v55 = vand.u32 2147483647, %v3477_v35  ;;  %vm3515_vm3 = vcmp.eq.f32.partialorder %v1970_v1, 8.507059e+37 }
 0x123   : > { %v1724_v13 = vmul.f32 %v2469_v52, %v1723_v54  ;;  %v1962_v58 = vmul.f32 %v2475_v16, %v3467_v49  ;;  %v886_v29 = vand.u32 2147483648, %v3477_v35  ;;  %2478 = vrcp.f32 %v3502_v62  ;;  %v1407_v54 = vpop.f32.mrf.mxu3 }
 0x124   : > { %v864_v27 = vadd.f32 %v2467_v38, %v863_v7  ;;  %v1102_v57 = vsub.f32 1.0, %v1101_v14  ;;  %vm1106_vm5 = vweird.f32 %v2473_v21  ;;  %2480 = vpow2.f32 %v1581_v51  ;;  %v2477_v30 = vpop.eup %2476 }
 0x125   : > { %v1725_v28 = vadd.f32 %v2469_v52, %v1724_v13  ;;  %v1963_v34 = vsub.f32 1.0, %v1962_v58  ;;  %vm1967_vm8 = vweird.f32 %v2475_v16  ;;  %2482 = vrcp.f32 %v3505_v9  ;;  %vm1107_vm9 = vmor %vm1105_vm13, %vm1106_vm5 }
 0x126   : > { %v868_v56 = vsel %vm867_vm4, %v2467_v38, %v864_v27  ;;  %v1103_v42 = vmul.f32 %v2473_v21, %v1102_v57  ;;  %v876_v59 = vmul.f32 %v2477_v30, %v3477_v35  ;;  %vm3531_vm7 = vcmp.eq.f32.partialorder %v884_v55, 8.507059e+37 }
 0x127   : > { %v873_v10 = vsel %vm3488_vm10, %v872_v2, %v868_v56  ;;  %v1729_v8 = vsel %vm1728_vm6, %v2469_v52, %v1725_v28  ;;  %v1964_v39 = vmul.f32 %v2475_v16, %v1963_v34  ;;  %v1745_v44 = vand.u32 2147483647, %v3502_v62  ;;  %v501_v28 = vpop.f32.mrf.mxu0  ;;  %v1362_v56 = vpop.f32.mrf.mxu1 }
 0x128   : > { %v1256_v32 = vmul.f32 %v873_v10, %v3381_v22  ;;  %v1734_v18 = vsel %vm3494_vm11, %v1733_v43, %v1729_v8  ;;  %v1104_v46 = vadd.f32 %v2473_v21, %v1103_v42  ;;  %v877_v38 = vsub.f32 1.0, %v876_v59  ;;  %vm1968_vm11 = vmor %vm1966_vm15, %vm1967_vm8 }
 0x129   : > { %v2117_v45 = vmul.f32 %v1734_v18, %v3389_v26  ;;  %v3542_v11 = vadd.f32 %v3378_v61, %v3472_v31  ;;  %v2479_v52 = vpop.eup %2478  ;;  %v1965_v22 = vadd.f32 %v2475_v16, %v1964_v39  ;;  %v887_v60 = vor.u32 1.1754944e-38, %v886_v29  ;;  %v546_v26 = vpop.f32.mrf.mxu2 }
 0x12a   : > { %1288 = vst.msk [vmem:[%s2929_s26 + $0x30] sm:$0xff] %vm356_vm1, %v1256_v32  ;;  %vm1741_vm10 = vweird.f32 %v3502_v62  ;;  %v1747_v23 = vand.u32 2147483648, %v3502_v62  ;;  %v2481_v2 = vpop.eup %2480  ;;  %v1108_v63 = vsel %vm1107_vm9, %v2473_v21, %v1104_v46  ;;  %v878_v31 = vmul.f32 %v2477_v30, %v877_v38 }
 0x12b   : > { %2149 = vst.msk [vmem:[%s2939_s30 + $0x30] sm:$0xff] %vm356_vm1, %v2117_v45  ;;  %vm881_vm12 = vweird.f32 %v2477_v30  ;;  %v1737_v36 = vmul.f32 %v2479_v52, %v3502_v62  ;;  %v2483_v3 = vpop.eup %2482  ;;  %v1113_v17 = vsel %vm3508_vm0, %v1112_v6, %v1108_v63  ;;  %v1969_v43 = vsel %vm1968_vm11, %v2475_v16, %v1965_v22  ;;  %v1410_v38 = vpop.f32.mrf.mxu3 }
 0x12c   : > { %vm3559_vm13 = vcmp.eq.f32.partialorder %v1745_v44, 8.507059e+37  ;;  %v1124_v0 = vand.u32 2147483647, %v3505_v9  ;;  %v1272_v49 = vmul.f32 %v1113_v17, %v3417_v50  ;;  %v1974_v1 = vsel %vm3515_vm3, %v1973_v48, %v1969_v43  ;;  %vm882_vm14 = vmor %vm880_vm2, %vm881_vm12 }
 0x12d   : > { %v879_v51 = vadd.f32 %v2477_v30, %v878_v31  ;;  %v1738_v5 = vsub.f32 1.0, %v1737_v36  ;;  %v2133_v21 = vmul.f32 %v1974_v1, %v3420_v20  ;;  %vm1742_vm15 = vweird.f32 %v2479_v52 }
 0x12e   : > { %v1116_v6 = vmul.f32 %v2483_v3, %v3505_v9  ;;  %v1126_v7 = vand.u32 2147483648, %v3505_v9  ;;  %1304 = vst.msk [vmem:[%s2929_s26 + $0xb0] sm:$0xff] %vm356_vm1, %v1272_v49  ;;  %v3574_v13 = vadd.f32 1.0, %v2481_v2  ;;  %v650_v48 = vsub.f32 0.0, %v3542_v11  ;;  %vm1743_vm0 = vmor %vm1741_vm10, %vm1742_vm15 }
 0x12f   : > { %v883_v16 = vsel %vm882_vm14, %v2477_v30, %v879_v51  ;;  %v1739_v50 = vmul.f32 %v2479_v52, %v1738_v5  ;;  %2165 = vst.msk [vmem:[%s2939_s30 + $0xb0] sm:$0xff] %vm356_vm1, %v2133_v21  ;;  %v3583_v14 = vadd.f32 %v3386_v25, %v3481_v47  ;;  %v598_v15 = vmul.f32 %v3357_v41, %v546_v26  ;;  %v504_v51 = vpop.f32.mrf.mxu0 }
 0x130   : > { %v888_v20 = vsel %vm3531_vm7, %v887_v60, %v883_v16  ;;  %v1117_v35 = vsub.f32 1.0, %v1116_v6  ;;  %v1748_v58 = vor.u32 1.1754944e-38, %v1747_v23  ;;  %2484 = vrcp.f32 %v3574_v13 }
 0x131   : > { %v1257_v55 = vmul.f32 %v888_v20, %v3423_v33  ;;  %v1740_v27 = vadd.f32 %v2479_v52, %v1739_v50  ;;  %vm1120_vm2 = vweird.f32 %v3505_v9  ;;  %vm1121_vm3 = vweird.f32 %v2483_v3  ;;  %v549_v8 = vpop.f32.mrf.mxu2 }
 0x132   : > { %v1118_v19 = vmul.f32 %v2483_v3, %v1117_v35  ;;  %v690_v29 = vmul.f32 1.442695, %v650_v48  ;;  %v1511_v57 = vsub.f32 0.0, %v3583_v14  ;;  %v3596_v33 = vadd.f32 %v3378_v61, %v598_v15  ;;  %vm1122_vm5 = vmor %vm1120_vm2, %vm1121_vm3 }
 0x133   : > { %1289 = vst.msk [vmem:[%s2929_s26 + $0x38] sm:$0xff] %vm356_vm1, %v1257_v55  ;;  %v1744_v47 = vsel %vm1743_vm0, %v2479_v52, %v1740_v27  ;;  %v1459_v30 = vmul.f32 %v3363_v12, %v1407_v54  ;;  %vm1125_vm4 = vcmp.eq.f32.partialorder %v1124_v0, 8.507059e+37  ;;  %v1127_v10 = vor.u32 1.1754944e-38, %v1126_v7  ;;  %v1365_v55 = vpop.f32.mrf.mxu1 }
 0x134   : > { %v1749_v62 = vsel %vm3559_vm13, %v1748_v58, %v1744_v47  ;;  %v1119_v34 = vadd.f32 %v2483_v3, %v1118_v19  ;;  %2486 = vpow2.f32 %v690_v29  ;;  %v1551_v59 = vmul.f32 1.442695, %v1511_v57 }
 0x135   : > { %v2118_v42 = vmul.f32 %v1749_v62, %v3433_v4  ;;  %v666_v37 = vsub.f32 0.0, %v3596_v33  ;;  %v3607_v18 = vadd.f32 %v3386_v25, %v1459_v30  ;;  %v583_v39 = vmul.f32 %v3357_v41, %v501_v28 }
 0x136   : > { %v1123_v32 = vsel %vm1122_vm5, %v2483_v3, %v1119_v34  ;;  %v1444_v44 = vmul.f32 %v3363_v12, %v1362_v56  ;;  %v2485_v45 = vpop.eup %2484  ;;  %2488 = vpow2.f32 %v1551_v59  ;;  %v599_v46 = vmul.f32 %v3357_v41, %v549_v8 }
 0x137   : > { %2150 = vst.msk [vmem:[%s2939_s30 + $0x38] sm:$0xff] %vm356_vm1, %v2118_v42  ;;  %v1128_v4 = vsel %vm1125_vm4, %v1127_v10, %v1123_v32  ;;  %v722_v9 = vmul.f32 1.442695, %v666_v37  ;;  %v1977_v22 = vmul.f32 %v2485_v45, %v3574_v13  ;;  %v1527_v60 = vsub.f32 0.0, %v3607_v18 }
 0x138   : > { %v1273_v52 = vmul.f32 %v1128_v4, %v3442_v24  ;;  %v3618_v23 = vadd.f32 %v3378_v61, %v583_v39  ;;  %v3621_v26 = vadd.f32 %v3386_v25, %v1444_v44  ;;  %v3624_v2 = vadd.f32 %v3378_v61, %v599_v46 }
 0x139   : > { %2490 = vpow2.f32 %v722_v9  ;;  %v1978_v63 = vsub.f32 1.0, %v1977_v22  ;;  %v1985_v31 = vand.u32 2147483647, %v3574_v13  ;;  %v1583_v24 = vmul.f32 1.442695, %v1527_v60 }
 0x13a   : > { %1305 = vst.msk [vmem:[%s2929_s26 + $0xb8] sm:$0xff] %vm356_vm1, %v1273_v52  ;;  %v1460_v36 = vmul.f32 %v3363_v12, %v1410_v38  ;;  %v2487_v3 = vpop.eup %2486  ;;  %vm1982_vm6 = vweird.f32 %v2485_v45  ;;  %v1987_v17 = vand.u32 2147483648, %v3574_v13  ;;  %v651_v43 = vsub.f32 0.0, %v3618_v23 }
 0x13b   : > { %v1512_v53 = vsub.f32 0.0, %v3621_v26  ;;  %v1979_v0 = vmul.f32 %v2485_v45, %v1978_v63  ;;  %v3633_v49 = vadd.f32 1.0, %v2487_v3  ;;  %2492 = vpow2.f32 %v1583_v24 }
 0x13c   : > { %v667_v1 = vsub.f32 0.0, %v3624_v2  ;;  %v2489_v5 = vpop.eup %2488  ;;  %vm1981_vm8 = vweird.f32 %v3574_v13  ;;  %v692_v54 = vmul.f32 1.442695, %v651_v43  ;;  %vm1986_vm7 = vcmp.eq.f32.partialorder %v1985_v31, 8.507059e+37 }
 0x13d   : > { %v1553_v21 = vmul.f32 1.442695, %v1512_v53  ;;  %v1980_v6 = vadd.f32 %v2485_v45, %v1979_v0  ;;  %2494 = vrcp.f32 %v3633_v49  ;;  %v3639_v7 = vadd.f32 %v3386_v25, %v1460_v36  ;;  %vm1983_vm9 = vmor %vm1981_vm8, %vm1982_vm6 }
 0x13e   : > { %v1988_v50 = vor.u32 1.1754944e-38, %v1987_v17  ;;  %v3642_v48 = vadd.f32 1.0, %v2489_v5  ;;  %2496 = vpow2.f32 %v692_v54  ;;  %v584_v20 = vmul.f32 %v3357_v41, %v504_v51 }
 0x13f   : > { %v2491_v16 = vpop.eup %2490  ;;  %v1984_v35 = vsel %vm1983_vm9, %v2485_v45, %v1980_v6  ;;  %2498 = vpow2.f32 %v1553_v21  ;;  %v724_v15 = vmul.f32 1.442695, %v667_v1  ;;  %v899_v58 = vand.u32 2147483647, %v3633_v49 }
 0x140   : > { %v3645_v13 = vadd.f32 1.0, %v2491_v16  ;;  %v1989_v27 = vsel %vm1986_vm7, %v1988_v50, %v1984_v35  ;;  %v901_v19 = vand.u32 2147483648, %v3633_v49  ;;  %2500 = vrcp.f32 %v3642_v48  ;;  %v1368_v35 = vpop.f32.mrf.mxu1 }
 0x141   : > { %v2493_v29 = vpop.eup %2492  ;;  %v2134_v28 = vmul.f32 %v1989_v27, %v3460_v40  ;;  %v1528_v47 = vsub.f32 0.0, %v3639_v7  ;;  %v3656_v30 = vmul.f32 %v3363_v12, %v1365_v55  ;;  %vm895_vm10 = vweird.f32 %v3633_v49 }
 0x142   : > { %2502 = vrcp.f32 %v3645_v13  ;;  %v3653_v57 = vadd.f32 1.0, %v2493_v29  ;;  %v1760_v62 = vand.u32 2147483647, %v3642_v48  ;;  %v1762_v34 = vand.u32 2147483648, %v3642_v48 }
 0x143   : > { %v2495_v56 = vpop.eup %2494  ;;  %2166 = vst.msk [vmem:[%s2939_s30 + $0xb8] sm:$0xff] %vm356_vm1, %v2134_v28  ;;  %v3664_v40 = vadd.f32 %v3378_v61, %v584_v20  ;;  %vm3667_vm11 = vcmp.eq.f32.partialorder %v899_v58, 8.507059e+37  ;;  %v902_v59 = vor.u32 1.1754944e-38, %v901_v19  ;;  %v1139_v37 = vand.u32 2147483647, %v3645_v13 }
 0x144   : > { %v2497_v10 = vpop.eup %2496  ;;  %v891_v8 = vmul.f32 %v2495_v56, %v3633_v49  ;;  %2504 = vpow2.f32 %v724_v15  ;;  %vm1756_vm12 = vweird.f32 %v3642_v48  ;;  %v1141_v39 = vand.u32 2147483648, %v3645_v13 }
 0x145   : > { %v2499_v32 = vpop.eup %2498  ;;  %2506 = vrcp.f32 %v3653_v57  ;;  %v1585_v44 = vmul.f32 1.442695, %v1528_v47  ;;  %vm1135_vm13 = vweird.f32 %v3645_v13  ;;  %v2002_v9 = vand.u32 2147483648, %v3653_v57 }
 0x146   : > { %v2501_v45 = vpop.eup %2500  ;;  %v892_v4 = vsub.f32 1.0, %v891_v8  ;;  %v3677_v46 = vadd.f32 1.0, %v2497_v10  ;;  %v3679_v38 = vadd.f32 1.0, %v2499_v32  ;;  %vm896_vm14 = vweird.f32 %v2495_v56 }
 0x147   : > { %v1752_v22 = vmul.f32 %v2501_v45, %v3642_v48  ;;  %vm3682_vm15 = vcmp.eq.f32.partialorder %v1760_v62, 8.507059e+37  ;;  %v1763_v63 = vor.u32 1.1754944e-38, %v1762_v34  ;;  %vm3687_vm0 = vcmp.eq.f32.partialorder %v1139_v37, 8.507059e+37  ;;  %vm897_vm4 = vmor %vm895_vm10, %vm896_vm14  ;;  %v3724_v48 = vpop.f32.mrf.mxu2 }
 0x148   : > { %v2503_v52 = vpop.eup %2502  ;;  %v893_v31 = vmul.f32 %v2495_v56, %v892_v4  ;;  %v2000_v3 = vand.u32 2147483647, %v3653_v57  ;;  %2508 = vrcp.f32 %v3677_v46  ;;  %vm1757_vm2 = vweird.f32 %v2501_v45 }
 0x149   : > { %v1131_v24 = vmul.f32 %v2503_v52, %v3645_v13  ;;  %v1753_v17 = vsub.f32 1.0, %v1752_v22  ;;  %v1142_v43 = vor.u32 1.1754944e-38, %v1141_v39  ;;  %2510 = vpow2.f32 %v1585_v44  ;;  %vm1758_vm9 = vmor %vm1756_vm12, %vm1757_vm2 }
 0x14a   : > { %v2505_v53 = vpop.eup %2504  ;;  %v894_v0 = vadd.f32 %v2495_v56, %v893_v31  ;;  %vm1996_vm3 = vweird.f32 %v3653_v57  ;;  %v2003_v51 = vor.u32 1.1754944e-38, %v2002_v9  ;;  %2512 = vrcp.f32 %v3679_v38 }
 0x14b   : > { %v1132_v1 = vsub.f32 1.0, %v1131_v24  ;;  %v2507_v5 = vpop.eup %2506  ;;  %v1754_v54 = vmul.f32 %v2501_v45, %v1753_v17  ;;  %vm1136_vm5 = vweird.f32 %v2503_v52  ;;  %v914_v21 = vand.u32 2147483647, %v3677_v46 }
 0x14c   : > { %v916_v6 = vand.u32 2147483648, %v3677_v46  ;;  %v898_v16 = vsel %vm897_vm4, %v2495_v56, %v894_v0  ;;  %v1992_v20 = vmul.f32 %v2507_v5, %v3653_v57  ;;  %vm3701_vm6 = vcmp.eq.f32.partialorder %v2000_v3, 8.507059e+37  ;;  %vm1137_vm10 = vmor %vm1135_vm13, %vm1136_vm5 }
 0x14d   : > { %v1133_v50 = vmul.f32 %v2503_v52, %v1132_v1  ;;  %vm910_vm8 = vweird.f32 %v3677_v46  ;;  %v903_v49 = vsel %vm3667_vm11, %v902_v59, %v898_v16  ;;  %v1755_v15 = vadd.f32 %v2501_v45, %v1754_v54 }
 0x14e   : > { %vm1771_vm7 = vweird.f32 %v3679_v38  ;;  %v1775_v55 = vand.u32 2147483647, %v3679_v38  ;;  %v2509_v27 = vpop.eup %2508  ;;  %v1258_v58 = vmul.f32 %v903_v49, %v3542_v11  ;;  %v1993_v29 = vsub.f32 1.0, %v1992_v20 }
 0x14f   : > { %v1134_v19 = vadd.f32 %v2503_v52, %v1133_v50  ;;  %v3714_v28 = vadd.f32 1.0, %v2505_v53  ;;  %v2511_v47 = vpop.eup %2510  ;;  %v1759_v56 = vsel %vm1758_vm9, %v2501_v45, %v1755_v15  ;;  %vm1997_vm11 = vweird.f32 %v2507_v5  ;;  %v555_v49 = vpop.f32.mrf.mxu2 }
 0x150   : > { %v906_v62 = vmul.f32 %v2509_v27, %v3677_v46  ;;  %vm3720_vm14 = vcmp.eq.f32.partialorder %v914_v21, 8.507059e+37  ;;  %v917_v11 = vor.u32 1.1754944e-38, %v916_v6  ;;  %v2513_v10 = vpop.eup %2512  ;;  %1290 = vst.msk [vmem:[%s2929_s26 + $0x40] sm:$0xff] %vm356_vm1, %v1258_v58  ;;  %v1764_v8 = vsel %vm3682_vm15, %v1763_v63, %v1759_v56  ;;  %vm1998_vm15 = vmor %vm1996_vm3, %vm1997_vm11  ;;  %v507_v21 = vpop.f32.mrf.mxu0 }
 0x151   : > { %v1138_v42 = vsel %vm1137_vm10, %v2503_v52, %v1134_v19  ;;  %v1994_v13 = vmul.f32 %v2507_v5, %v1993_v29  ;;  %2514 = vrcp.f32 %v3714_v28  ;;  %v2119_v59 = vmul.f32 %v1764_v8, %v3583_v14  ;;  %v1413_v52 = vpop.f32.mrf.mxu3 }
 0x152   : > { %v1143_v37 = vsel %vm3687_vm0, %v1142_v43, %v1138_v42  ;;  %v907_v32 = vsub.f32 1.0, %v906_v62  ;;  %v1767_v39 = vmul.f32 %v2513_v10, %v3679_v38  ;;  %vm3735_vm12 = vcmp.eq.f32.partialorder %v1775_v55, 8.507059e+37 }
 0x153   : > { %v1274_v45 = vmul.f32 %v1143_v37, %v3596_v33  ;;  %v1995_v4 = vadd.f32 %v2507_v5, %v1994_v13  ;;  %vm911_vm13 = vweird.f32 %v2509_v27  ;;  %v1777_v9 = vand.u32 2147483648, %v3679_v38  ;;  %2151 = vst.msk [vmem:[%s2939_s30 + $0x40] sm:$0xff] %vm356_vm1, %v2119_v59 }
 0x154   : > { %v908_v14 = vmul.f32 %v2509_v27, %v907_v32  ;;  %v1768_v22 = vsub.f32 1.0, %v1767_v39  ;;  %vm1772_vm0 = vweird.f32 %v2513_v10  ;;  %v1154_v60 = vand.u32 2147483647, %v3714_v28  ;;  %vm912_vm2 = vmor %vm910_vm8, %vm911_vm13 }
 0x155   : > { %1306 = vst.msk [vmem:[%s2929_s26 + $0xc0] sm:$0xff] %vm356_vm1, %v1274_v45  ;;  %v1999_v63 = vsel %vm1998_vm15, %v2507_v5, %v1995_v4  ;;  %v1156_v33 = vand.u32 2147483648, %v3714_v28  ;;  %v3750_v31 = vadd.f32 1.0, %v2511_v47  ;;  %v652_v24 = vsub.f32 0.0, %v3664_v40  ;;  %vm1773_vm5 = vmor %vm1771_vm7, %vm1772_vm0 }
 0x156   : > { %v2004_v36 = vsel %vm3701_vm6, %v2003_v51, %v1999_v63  ;;  %v909_v57 = vadd.f32 %v2509_v27, %v908_v14  ;;  %v1769_v3 = vmul.f32 %v2513_v10, %v1768_v22  ;;  %v3757_v17 = vadd.f32 %v3386_v25, %v3656_v30 }
 0x157   : > { %v2515_v43 = vpop.eup %2514  ;;  %v2135_v53 = vmul.f32 %v2004_v36, %v3607_v18  ;;  %v1778_v0 = vor.u32 1.1754944e-38, %v1777_v9  ;;  %vm1150_vm3 = vweird.f32 %v3714_v28  ;;  %2516 = vrcp.f32 %v3750_v31 }
 0x158   : > { %v913_v1 = vsel %vm912_vm2, %v2509_v27, %v909_v57  ;;  %v1770_v51 = vadd.f32 %v2513_v10, %v1769_v3  ;;  %v1146_v5 = vmul.f32 %v2515_v43, %v3714_v28  ;;  %vm3766_vm4 = vcmp.eq.f32.partialorder %v1154_v60, 8.507059e+37  ;;  %v510_v54 = vpop.f32.mrf.mxu0 }
 0x159   : > { %2167 = vst.msk [vmem:[%s2939_s30 + $0xc0] sm:$0xff] %vm356_vm1, %v2135_v53  ;;  %v918_v18 = vsel %vm3720_vm14, %v917_v11, %v913_v1  ;;  %vm1151_vm6 = vweird.f32 %v2515_v43  ;;  %v1157_v30 = vor.u32 1.1754944e-38, %v1156_v33  ;;  %v694_v46 = vmul.f32 1.442695, %v652_v24  ;;  %v1416_v11 = vpop.f32.mrf.mxu3 }
 0x15a   : > { %v1259_v6 = vmul.f32 %v918_v18, %v3618_v23  ;;  %v1774_v16 = vsel %vm1773_vm5, %v2513_v10, %v1770_v51  ;;  %v1147_v50 = vsub.f32 1.0, %v1146_v5  ;;  %v1513_v20 = vsub.f32 0.0, %v3757_v17  ;;  %vm1152_vm7 = vmor %vm1150_vm3, %vm1151_vm6  ;;  %v1371_v18 = vpop.f32.mrf.mxu1 }
 0x15b   : > { %v1779_v15 = vsel %vm3735_vm12, %v1778_v0, %v1774_v16  ;;  %v2015_v38 = vand.u32 2147483647, %v3750_v31  ;;  %v2017_v55 = vand.u32 2147483648, %v3750_v31  ;;  %2518 = vpow2.f32 %v694_v46  ;;  %v558_v46 = vpop.f32.mrf.mxu2 }
 0x15c   : > { %1291 = vst.msk [vmem:[%s2929_s26 + $0x48] sm:$0xff] %vm356_vm1, %v1259_v6  ;;  %v2120_v27 = vmul.f32 %v1779_v15, %v3621_v26  ;;  %v1148_v23 = vmul.f32 %v2515_v43, %v1147_v50  ;;  %v1555_v58 = vmul.f32 1.442695, %v1513_v20  ;;  %v600_v19 = vmul.f32 %v3357_v41, %v3724_v48 }
 0x15d   : > { %v2517_v29 = vpop.eup %2516  ;;  %v1461_v47 = vmul.f32 %v3363_v12, %v1413_v52  ;;  %v585_v56 = vmul.f32 %v3357_v41, %v507_v21  ;;  %v1446_v62 = vmul.f32 %v3363_v12, %v1368_v35  ;;  %v601_v34 = vmul.f32 %v3357_v41, %v555_v49 }
 0x15e   : > { %2152 = vst.msk [vmem:[%s2939_s30 + $0x48] sm:$0xff] %vm356_vm1, %v2120_v27  ;;  %v1149_v10 = vadd.f32 %v2515_v43, %v1148_v23  ;;  %v2007_v26 = vmul.f32 %v2517_v29, %v3750_v31  ;;  %vm2012_vm8 = vweird.f32 %v2517_v29  ;;  %2520 = vpow2.f32 %v1555_v58  ;;  %v3856_v23 = vld [vmem:[%s4320_s3] ss:$0 sm:$0xff] }
 0x15f   : > { %v3799_v48 = vadd.f32 %v3378_v61, %v600_v19  ;;  %v3802_v8 = vadd.f32 %v3386_v25, %v1461_v47  ;;  %v3805_v42 = vadd.f32 %v3378_v61, %v585_v56  ;;  %v3808_v13 = vadd.f32 %v3386_v25, %v1446_v62 }
 0x160   : > { %v1153_v59 = vsel %vm1152_vm7, %v2515_v43, %v1149_v10  ;;  %v2008_v37 = vsub.f32 1.0, %v2007_v26  ;;  %v3811_v32 = vadd.f32 %v3378_v61, %v601_v34  ;;  %v1462_v28 = vmul.f32 %v3363_v12, %v1416_v11  ;;  %v3872_v10 = vld [vmem:[%s4321_s4] ss:$0 sm:$0xff] }
 0x161   : > { %v2519_v39 = vpop.eup %2518  ;;  %v1158_v44 = vsel %vm3766_vm4, %v1157_v30, %v1153_v59  ;;  %v668_v45 = vsub.f32 0.0, %v3799_v48  ;;  %v1529_v4 = vsub.f32 0.0, %v3802_v8  ;;  %v653_v9 = vsub.f32 0.0, %v3805_v42  ;;  %v3880_v59 = vld [vmem:[%s4323_s6] ss:$0 sm:$0xff] }
 0x162   : > { %v1275_v52 = vmul.f32 %v1158_v44, %v3624_v2  ;;  %v2009_v14 = vmul.f32 %v2517_v29, %v2008_v37  ;;  %v3820_v22 = vadd.f32 1.0, %v2519_v39  ;;  %v1514_v61 = vsub.f32 0.0, %v3808_v13  ;;  %v1419_v44 = vpop.f32.mrf.mxu3 }
 0x163   : > { %vm2011_vm9 = vweird.f32 %v3750_v31  ;;  %v726_v60 = vmul.f32 1.442695, %v668_v45  ;;  %v1587_v63 = vmul.f32 1.442695, %v1529_v4  ;;  %v2018_v36 = vor.u32 1.1754944e-38, %v2017_v55 }
 0x164   : > { %v2521_v33 = vpop.eup %2520  ;;  %1307 = vst.msk [vmem:[%s2929_s26 + $0xc8] sm:$0xff] %vm356_vm1, %v1275_v52  ;;  %v2010_v24 = vadd.f32 %v2517_v29, %v2009_v14  ;;  %2522 = vrcp.f32 %v3820_v22  ;;  %v696_v57 = vmul.f32 1.442695, %v653_v9  ;;  %vm2013_vm10 = vmor %vm2011_vm9, %vm2012_vm8  ;;  %v1557_v3 = vmul.f32 1.442695, %v1514_v61 }
 0x165   : > { %v3828_v2 = vadd.f32 1.0, %v2521_v33  ;;  %2524 = vpow2.f32 %v726_v60  ;;  %v3831_v43 = vadd.f32 %v3386_v25, %v1462_v28  ;;  %vm2016_vm11 = vcmp.eq.f32.partialorder %v2015_v38, 8.507059e+37 }
 0x166   : > { %v2014_v31 = vsel %vm2013_vm10, %v2517_v29, %v2010_v24  ;;  %2526 = vpow2.f32 %v1587_v63  ;;  %v669_v53 = vsub.f32 0.0, %v3811_v32  ;;  %v929_v1 = vand.u32 2147483647, %v3820_v22 }
 0x167   : > { %v2019_v0 = vsel %vm2016_vm11, %v2018_v36, %v2014_v31  ;;  %2528 = vrcp.f32 %v3828_v2  ;;  %v931_v5 = vand.u32 2147483648, %v3820_v22  ;;  %v1530_v30 = vsub.f32 0.0, %v3831_v43  ;;  %v3904_v36 = vld [vmem:[%s4322_s5] ss:$0 sm:$0xff] }
 0x168   : > { %v2136_v51 = vmul.f32 %v2019_v0, %v3639_v7  ;;  %2530 = vpow2.f32 %v696_v57  ;;  %v728_v25 = vmul.f32 1.442695, %v669_v53  ;;  %vm925_vm14 = vweird.f32 %v3820_v22 }
 0x169   : > { %2532 = vpow2.f32 %v1557_v3  ;;  %v1790_v6 = vand.u32 2147483647, %v3828_v2  ;;  %v1792_v16 = vand.u32 2147483648, %v3828_v2  ;;  %vm3845_vm12 = vcmp.eq.f32.partialorder %v929_v1, 8.507059e+37 }
 0x16a   : > { %v2523_v21 = vpop.eup %2522  ;;  %2168 = vst.msk [vmem:[%s2939_s30 + $0xc8] sm:$0xff] %vm356_vm1, %v2136_v51  ;;  %v586_v35 = vmul.f32 %v3357_v41, %v510_v54  ;;  %v1447_v49 = vmul.f32 %v3363_v12, %v1371_v18  ;;  %v932_v38 = vor.u32 1.1754944e-38, %v931_v5  ;;  %v1589_v27 = vmul.f32 1.442695, %v1530_v30 }
 0x16b   : > { %v2525_v7 = vpop.eup %2524  ;;  %v921_v50 = vmul.f32 %v2523_v21, %v3820_v22  ;;  %v602_v58 = vmul.f32 %v3856_v23, %v558_v46  ;;  %vm1786_vm13 = vweird.f32 %v3828_v2  ;;  %2534 = vpow2.f32 %v728_v25 }
 0x16c   : > { %v2527_v15 = vpop.eup %2526  ;;  %v3851_v55 = vadd.f32 1.0, %v2525_v7  ;;  %vm926_vm15 = vweird.f32 %v2523_v21  ;;  %vm3863_vm0 = vcmp.eq.f32.partialorder %v1790_v6, 8.507059e+37  ;;  %v1793_v62 = vor.u32 1.1754944e-38, %v1792_v16 }
 0x16d   : > { %v2529_v19 = vpop.eup %2528  ;;  %v922_v29 = vsub.f32 1.0, %v921_v50  ;;  %v3860_v47 = vadd.f32 1.0, %v2527_v15  ;;  %v3875_v26 = vadd.f32 %v3872_v10, %v586_v35  ;;  %v3883_v37 = vadd.f32 %v3880_v59, %v1447_v49  ;;  %vm927_vm3 = vmor %vm925_vm14, %vm926_vm15 }
 0x16e   : > { %v2531_v41 = vpop.eup %2530  ;;  %v1782_v12 = vmul.f32 %v2529_v19, %v3828_v2  ;;  %2536 = vrcp.f32 %v3851_v55  ;;  %vm1787_vm2 = vweird.f32 %v2529_v19  ;;  %v3886_v39 = vadd.f32 %v3872_v10, %v602_v58 }
 0x16f   : > { %v2533_v34 = vpop.eup %2532  ;;  %v923_v11 = vmul.f32 %v2523_v21, %v922_v29  ;;  %2538 = vrcp.f32 %v3860_v47  ;;  %v1169_v4 = vand.u32 2147483647, %v3851_v55  ;;  %v1171_v9 = vand.u32 2147483648, %v3851_v55  ;;  %vm1788_vm6 = vmor %vm1786_vm13, %vm1787_vm2 }
 0x170   : > { %v1783_v28 = vsub.f32 1.0, %v1782_v12  ;;  %2540 = vpow2.f32 %v1589_v27  ;;  %v3890_v52 = vadd.f32 1.0, %v2531_v41  ;;  %v2030_v61 = vand.u32 2147483647, %v3860_v47 }
 0x171   : > { %v924_v45 = vadd.f32 %v2523_v21, %v923_v11  ;;  %v2032_v60 = vand.u32 2147483648, %v3860_v47  ;;  %v3897_v63 = vadd.f32 1.0, %v2533_v34  ;;  %v2535_v33 = vpop.eup %2534  ;;  %vm1165_vm4 = vweird.f32 %v3851_v55 }
 0x172   : > { %v1784_v14 = vmul.f32 %v2529_v19, %v1783_v28  ;;  %2542 = vrcp.f32 %v3890_v52  ;;  %v3907_v22 = vmul.f32 %v3904_v36, %v1419_v44  ;;  %vm2026_vm5 = vweird.f32 %v3860_v47 }
 0x173   : > { %v928_v24 = vsel %vm927_vm3, %v2523_v21, %v924_v45  ;;  %2544 = vrcp.f32 %v3897_v63  ;;  %vm3918_vm8 = vcmp.eq.f32.partialorder %v1169_v4, 8.507059e+37  ;;  %v1172_v5 = vor.u32 1.1754944e-38, %v1171_v9 }
 0x174   : > { %v2537_v57 = vpop.eup %2536  ;;  %v933_v3 = vsel %vm3845_vm12, %v932_v38, %v928_v24  ;;  %v1785_v31 = vadd.f32 %v2529_v19, %v1784_v14  ;;  %v946_v54 = vand.u32 2147483648, %v3890_v52  ;;  %vm3924_vm7 = vcmp.eq.f32.partialorder %v2030_v61, 8.507059e+37 }
 0x175   : > { %v2539_v53 = vpop.eup %2538  ;;  %v1260_v0 = vmul.f32 %v933_v3, %v3664_v40  ;;  %v1161_v1 = vmul.f32 %v2537_v57, %v3851_v55  ;;  %v2033_v40 = vor.u32 1.1754944e-38, %v2032_v60  ;;  %v944_v2 = vand.u32 2147483647, %v3890_v52 }
 0x176   : > { %v2541_v18 = vpop.eup %2540  ;;  %v1789_v25 = vsel %vm1788_vm6, %v2529_v19, %v1785_v31  ;;  %v2022_v30 = vmul.f32 %v2539_v53, %v3860_v47  ;;  %vm940_vm9 = vweird.f32 %v3890_v52  ;;  %v1805_v16 = vand.u32 2147483647, %v3897_v63 }
 0x177   : > { %1292 = vst.msk [vmem:[%s2929_s26 + $0x50] sm:$0xff] %vm356_vm1, %v1260_v0  ;;  %v1794_v21 = vsel %vm3863_vm0, %v1793_v62, %v1789_v25  ;;  %v1162_v6 = vsub.f32 1.0, %v1161_v1  ;;  %vm1166_vm10 = vweird.f32 %v2537_v57  ;;  %v3936_v20 = vadd.f32 1.0, %v2535_v33 }
 0x178   : > { %v2121_v7 = vmul.f32 %v1794_v21, %v3757_v17  ;;  %v2023_v50 = vsub.f32 1.0, %v2022_v30  ;;  %v2543_v35 = vpop.eup %2542  ;;  %vm2027_vm11 = vweird.f32 %v2539_v53  ;;  %v947_v15 = vor.u32 1.1754944e-38, %v946_v54  ;;  %vm1167_vm15 = vmor %vm1165_vm4, %vm1166_vm10  ;;  %v1374_v21 = vpop.f32.mrf.mxu1 }
 0x179   : > { %v1163_v49 = vmul.f32 %v2537_v57, %v1162_v6  ;;  %v3938_v38 = vadd.f32 1.0, %v2541_v18  ;;  %v2545_v27 = vpop.eup %2544  ;;  %v936_v19 = vmul.f32 %v2543_v35, %v3890_v52  ;;  %vm3943_vm14 = vcmp.eq.f32.partialorder %v944_v2, 8.507059e+37  ;;  %vm2028_vm2 = vmor %vm2026_vm5, %vm2027_vm11  ;;  %v561_v6 = vpop.f32.mrf.mxu2 }
 0x17a   : > { %2153 = vst.msk [vmem:[%s2939_s30 + $0x50] sm:$0xff] %vm356_vm1, %v2121_v7  ;;  %v2024_v58 = vmul.f32 %v2539_v53, %v2023_v50  ;;  %vm1801_vm12 = vweird.f32 %v3897_v63  ;;  %v1807_v17 = vand.u32 2147483648, %v3897_v63  ;;  %v1797_v12 = vmul.f32 %v2545_v27, %v3897_v63  ;;  %v513_v63 = vpop.f32.mrf.mxu0 }
 0x17b   : > { %v1164_v41 = vadd.f32 %v2537_v57, %v1163_v49  ;;  %vm3950_vm13 = vcmp.eq.f32.partialorder %v1805_v16, 8.507059e+37  ;;  %2546 = vrcp.f32 %v3936_v20  ;;  %v937_v34 = vsub.f32 1.0, %v936_v19 }
 0x17c   : > { %v2025_v62 = vadd.f32 %v2539_v53, %v2024_v58  ;;  %vm941_vm0 = vweird.f32 %v2543_v35  ;;  %v654_v11 = vsub.f32 0.0, %v3875_v26  ;;  %v1798_v44 = vsub.f32 1.0, %v1797_v12  ;;  %v1422_v12 = vpop.f32.mrf.mxu3 }
 0x17d   : > { %v1168_v28 = vsel %vm1167_vm15, %v2537_v57, %v1164_v41  ;;  %v1186_v45 = vand.u32 2147483648, %v3936_v20  ;;  %2548 = vrcp.f32 %v3938_v38  ;;  %v938_v9 = vmul.f32 %v2543_v35, %v937_v34  ;;  %vm942_vm5 = vmor %vm940_vm9, %vm941_vm0 }
 0x17e   : > { %v1173_v55 = vsel %vm3918_vm8, %v1172_v5, %v1168_v28  ;;  %v2029_v4 = vsel %vm2028_vm2, %v2539_v53, %v2025_v62  ;;  %v1184_v14 = vand.u32 2147483647, %v3936_v20  ;;  %v1799_v60 = vmul.f32 %v2545_v27, %v1798_v44 }
 0x17f   : > { %v1276_v61 = vmul.f32 %v1173_v55, %v3799_v48  ;;  %v2034_v47 = vsel %vm3924_vm7, %v2033_v40, %v2029_v4  ;;  %vm1802_vm3 = vweird.f32 %v2545_v27  ;;  %v939_v24 = vadd.f32 %v2543_v35, %v938_v9 }
 0x180   : > { %v2137_v33 = vmul.f32 %v2034_v47, %v3802_v8  ;;  %v1808_v57 = vor.u32 1.1754944e-38, %v1807_v17  ;;  %vm1180_vm4 = vweird.f32 %v3936_v20  ;;  %v1800_v31 = vadd.f32 %v2545_v27, %v1799_v60  ;;  %vm1803_vm6 = vmor %vm1801_vm12, %vm1802_vm3 }
 0x181   : > { %v2547_v3 = vpop.eup %2546  ;;  %1308 = vst.msk [vmem:[%s2929_s26 + $0xd0] sm:$0xff] %vm356_vm1, %v1276_v61  ;;  %v1187_v48 = vor.u32 1.1754944e-38, %v1186_v45  ;;  %v698_v53 = vmul.f32 1.442695, %v654_v11  ;;  %v1515_v0 = vsub.f32 0.0, %v3883_v37  ;;  %v943_v1 = vsel %vm942_vm5, %v2543_v35, %v939_v24 }
 0x182   : > { %2169 = vst.msk [vmem:[%s2939_s30 + $0xd0] sm:$0xff] %vm356_vm1, %v2137_v33  ;;  %v1176_v8 = vmul.f32 %v2547_v3, %v3936_v20  ;;  %vm3983_vm8 = vcmp.eq.f32.partialorder %v1184_v14, 8.507059e+37  ;;  %vm2041_vm7 = vweird.f32 %v3938_v38  ;;  %v2045_v52 = vand.u32 2147483647, %v3938_v38 }
 0x183   : > { %v2047_v5 = vand.u32 2147483648, %v3938_v38  ;;  %v2549_v54 = vpop.eup %2548  ;;  %v948_v18 = vsel %vm3943_vm14, %v947_v15, %v943_v1  ;;  %v1804_v25 = vsel %vm1803_vm6, %v2545_v27, %v1800_v31  ;;  %vm1181_vm9 = vweird.f32 %v2547_v3  ;;  %v516_v1 = vpop.f32.mrf.mxu0 }
 0x184   : > { %2550 = vpow2.f32 %v698_v53  ;;  %v1261_v30 = vmul.f32 %v948_v18, %v3805_v42  ;;  %v1809_v46 = vsel %vm3950_vm13, %v1808_v57, %v1804_v25  ;;  %v1177_v40 = vsub.f32 1.0, %v1176_v8  ;;  %vm1182_vm11 = vmor %vm1180_vm4, %vm1181_vm9  ;;  %v1377_v8 = vpop.f32.mrf.mxu1 }
 0x185   : > { %v2037_v2 = vmul.f32 %v2549_v54, %v3938_v38  ;;  %v2122_v16 = vmul.f32 %v1809_v46, %v3808_v13  ;;  %vm2042_vm10 = vweird.f32 %v2549_v54  ;;  %v1559_v7 = vmul.f32 1.442695, %v1515_v0 }
 0x186   : > { %v670_v50 = vsub.f32 0.0, %v3886_v39  ;;  %1293 = vst.msk [vmem:[%s2929_s26 + $0x58] sm:$0xff] %vm356_vm1, %v1261_v30  ;;  %v1178_v35 = vmul.f32 %v2547_v3, %v1177_v40  ;;  %v4002_v42 = vadd.f32 %v3880_v59, %v3907_v22  ;;  %v587_v15 = vmul.f32 %v3856_v23, %v513_v63  ;;  %vm2043_vm14 = vmor %vm2041_vm7, %vm2042_vm10 }
 0x187   : > { %v2038_v49 = vsub.f32 1.0, %v2037_v2  ;;  %2154 = vst.msk [vmem:[%s2939_s30 + $0x58] sm:$0xff] %vm356_vm1, %v2122_v16  ;;  %2552 = vpow2.f32 %v1559_v7  ;;  %v1448_v13 = vmul.f32 %v3904_v36, %v1374_v21  ;;  %v603_v58 = vmul.f32 %v3856_v23, %v561_v6 }
 0x188   : > { %v730_v27 = vmul.f32 1.442695, %v670_v50  ;;  %v1179_v19 = vadd.f32 %v2547_v3, %v1178_v35  ;;  %v1531_v17 = vsub.f32 0.0, %v4002_v42  ;;  %v4011_v41 = vadd.f32 %v3872_v10, %v587_v15 }
 0x189   : > { %v2039_v29 = vmul.f32 %v2549_v54, %v2038_v49  ;;  %v2048_v56 = vor.u32 1.1754944e-38, %v2047_v5  ;;  %v4017_v62 = vadd.f32 %v3880_v59, %v1448_v13  ;;  %v4020_v34 = vadd.f32 %v3872_v10, %v603_v58 }
 0x18a   : > { %v2551_v22 = vpop.eup %2550  ;;  %2554 = vpow2.f32 %v730_v27  ;;  %v1183_v11 = vsel %vm1182_vm11, %v2547_v3, %v1179_v19  ;;  %v1591_v45 = vmul.f32 1.442695, %v1531_v17  ;;  %v655_v20 = vsub.f32 0.0, %v4011_v41 }
 0x18b   : > { %v2040_v28 = vadd.f32 %v2549_v54, %v2039_v29  ;;  %v4022_v44 = vadd.f32 1.0, %v2551_v22  ;;  %v1188_v55 = vsel %vm3983_vm8, %v1187_v48, %v1183_v11  ;;  %v1516_v4 = vsub.f32 0.0, %v4017_v62 }
 0x18c   : > { %v1464_v9 = vmul.f32 %v3904_v36, %v1422_v12  ;;  %v1277_v14 = vmul.f32 %v1188_v55, %v3811_v32  ;;  %vm2046_vm12 = vcmp.eq.f32.partialorder %v2045_v52, 8.507059e+37  ;;  %v700_v24 = vmul.f32 1.442695, %v655_v20 }
 0x18d   : > { %v2044_v61 = vsel %vm2043_vm14, %v2549_v54, %v2040_v28  ;;  %2556 = vrcp.f32 %v4022_v44  ;;  %v2553_v47 = vpop.eup %2552  ;;  %v1561_v57 = vmul.f32 1.442695, %v1516_v4  ;;  %v671_v31 = vsub.f32 0.0, %v4020_v34 }
 0x18e   : > { %v2049_v60 = vsel %vm2046_vm12, %v2048_v56, %v2044_v61  ;;  %2558 = vpow2.f32 %v1591_v45  ;;  %1309 = vst.msk [vmem:[%s2929_s26 + $0xd8] sm:$0xff] %vm356_vm1, %v1277_v14  ;;  %v4037_v33 = vadd.f32 1.0, %v2553_v47  ;;  %v4041_v32 = vadd.f32 %v3880_v59, %v1464_v9 }
 0x18f   : > { %v2138_v38 = vmul.f32 %v2049_v60, %v3831_v43  ;;  %v959_v48 = vand.u32 2147483647, %v4022_v44  ;;  %v961_v53 = vand.u32 2147483648, %v4022_v44  ;;  %vm955_vm13 = vweird.f32 %v4022_v44 }
 0x190   : > { %v2555_v3 = vpop.eup %2554  ;;  %2560 = vrcp.f32 %v4037_v33  ;;  %v1532_v43 = vsub.f32 0.0, %v4041_v32  ;;  %v1822_v52 = vand.u32 2147483648, %v4037_v33  ;;  %v1820_v18 = vand.u32 2147483647, %v4037_v33 }
 0x191   : > { %2170 = vst.msk [vmem:[%s2939_s30 + $0xd8] sm:$0xff] %vm356_vm1, %v2138_v38  ;;  %v4048_v0 = vadd.f32 1.0, %v2555_v3  ;;  %2562 = vpow2.f32 %v700_v24  ;;  %v732_v25 = vmul.f32 1.442695, %v671_v31  ;;  %vm4056_vm15 = vcmp.eq.f32.partialorder %v959_v48, 8.507059e+37 }
 0x192   : > { %2564 = vpow2.f32 %v1561_v57  ;;  %v588_v46 = vmul.f32 %v3856_v23, %v516_v1  ;;  %v1449_v40 = vmul.f32 %v3904_v36, %v1377_v8  ;;  %v962_v21 = vor.u32 1.1754944e-38, %v961_v53 }
 0x193   : > { %v2557_v51 = vpop.eup %2556  ;;  %2566 = vrcp.f32 %v4048_v0  ;;  %vm1816_vm0 = vweird.f32 %v4037_v33  ;;  %v1593_v6 = vmul.f32 1.442695, %v1532_v43  ;;  %v1823_v7 = vor.u32 1.1754944e-38, %v1822_v52 }
 0x194   : > { %v2559_v5 = vpop.eup %2558  ;;  %v951_v54 = vmul.f32 %v2557_v51, %v4022_v44  ;;  %v1199_v50 = vand.u32 2147483647, %v4048_v0  ;;  %v1201_v35 = vand.u32 2147483648, %v4048_v0  ;;  %vm956_vm2 = vweird.f32 %v2557_v51 }
 0x195   : > { %v4060_v30 = vadd.f32 1.0, %v2559_v5  ;;  %vm4069_vm3 = vcmp.eq.f32.partialorder %v1820_v18, 8.507059e+37  ;;  %vm1195_vm4 = vweird.f32 %v4048_v0  ;;  %v4077_v29 = vadd.f32 %v3872_v10, %v588_v46  ;;  %vm957_vm5 = vmor %vm955_vm13, %vm956_vm2 }
 0x196   : > { %v952_v2 = vsub.f32 1.0, %v951_v54  ;;  %v2561_v16 = vpop.eup %2560  ;;  %v4080_v17 = vadd.f32 %v3880_v59, %v1449_v40  ;;  %vm4087_vm6 = vcmp.eq.f32.partialorder %v1199_v50, 8.507059e+37  ;;  %v1202_v55 = vor.u32 1.1754944e-38, %v1201_v35  ;;  %v564_v35 = vpop.f32.mrf.mxu2 }
 0x197   : > { %2568 = vrcp.f32 %v4060_v30  ;;  %v2563_v49 = vpop.eup %2562  ;;  %v1812_v27 = vmul.f32 %v2561_v16, %v4037_v33  ;;  %v2060_v20 = vand.u32 2147483647, %v4060_v30  ;;  %vm1817_vm8 = vweird.f32 %v2561_v16 }
 0x198   : > { %v953_v15 = vmul.f32 %v2557_v51, %v952_v2  ;;  %2570 = vpow2.f32 %v732_v25  ;;  %v2565_v58 = vpop.eup %2564  ;;  %v4074_v19 = vadd.f32 1.0, %v2563_v49  ;;  %vm2056_vm7 = vweird.f32 %v4060_v30  ;;  %vm1818_vm9 = vmor %vm1816_vm0, %vm1817_vm8 }
 0x199   : > { %v2567_v12 = vpop.eup %2566  ;;  %v1813_v56 = vsub.f32 1.0, %v1812_v27  ;;  %v4082_v11 = vadd.f32 1.0, %v2565_v58  ;;  %2572 = vpow2.f32 %v1593_v6  ;;  %v2062_v14 = vand.u32 2147483648, %v4060_v30 }
 0x19a   : > { %v954_v22 = vadd.f32 %v2557_v51, %v953_v15  ;;  %v1191_v28 = vmul.f32 %v2567_v12, %v4048_v0  ;;  %2574 = vrcp.f32 %v4074_v19  ;;  %v974_v60 = vand.u32 2147483647, %v4074_v19 }
 0x19b   : > { %v1814_v9 = vmul.f32 %v2561_v16, %v1813_v56  ;;  %2576 = vrcp.f32 %v4082_v11  ;;  %v976_v31 = vand.u32 2147483648, %v4074_v19  ;;  %vm1196_vm10 = vweird.f32 %v2567_v12 }
 0x19c   : > { %v958_v4 = vsel %vm957_vm5, %v2557_v51, %v954_v22  ;;  %v1192_v47 = vsub.f32 1.0, %v1191_v28  ;;  %vm4104_vm11 = vcmp.eq.f32.partialorder %v2060_v20, 8.507059e+37  ;;  %v656_v43 = vsub.f32 0.0, %v4077_v29  ;;  %vm1197_vm13 = vmor %vm1195_vm4, %vm1196_vm10 }
 0x19d   : > { %v2569_v44 = vpop.eup %2568  ;;  %v963_v61 = vsel %vm4056_vm15, %v962_v21, %v958_v4  ;;  %v1815_v57 = vadd.f32 %v2561_v16, %v1814_v9  ;;  %v2063_v51 = vor.u32 1.1754944e-38, %v2062_v14  ;;  %vm970_vm14 = vweird.f32 %v4074_v19 }
 0x19e   : > { %v2571_v38 = vpop.eup %2570  ;;  %v1262_v24 = vmul.f32 %v963_v61, %v3875_v26  ;;  %v2052_v3 = vmul.f32 %v2569_v44, %v4060_v30  ;;  %v1193_v48 = vmul.f32 %v2567_v12, %v1192_v47  ;;  %vm2057_vm12 = vweird.f32 %v2569_v44 }
 0x19f   : > { %v2573_v1 = vpop.eup %2572  ;;  %v1819_v26 = vsel %vm1818_vm9, %v2561_v16, %v1815_v57  ;;  %v4114_v54 = vadd.f32 1.0, %v2571_v38  ;;  %vm4121_vm15 = vcmp.eq.f32.partialorder %v974_v60, 8.507059e+37  ;;  %v977_v40 = vor.u32 1.1754944e-38, %v976_v31  ;;  %vm2058_vm0 = vmor %vm2056_vm7, %vm2057_vm12  ;;  %v1425_v60 = vpop.f32.mrf.mxu3 }
 0x1a0   : > { %1294 = vst.msk [vmem:[%s2929_s26 + $0x60] sm:$0xff] %vm356_vm1, %v1262_v24  ;;  %v2053_v8 = vsub.f32 1.0, %v2052_v3  ;;  %v2575_v52 = vpop.eup %2574  ;;  %v1824_v33 = vsel %vm4069_vm3, %v1823_v7, %v1819_v26  ;;  %v1194_v5 = vadd.f32 %v2567_v12, %v1193_v48  ;;  %v1835_v6 = vand.u32 2147483647, %v4082_v11 }
 0x1a1   : > { %v2123_v18 = vmul.f32 %v1824_v33, %v3883_v37  ;;  %v966_v63 = vmul.f32 %v2575_v52, %v4074_v19  ;;  %v2577_v2 = vpop.eup %2576  ;;  %2578 = vrcp.f32 %v4114_v54  ;;  %v4127_v16 = vadd.f32 1.0, %v2573_v1  ;;  %v519_v19 = vpop.f32.mrf.mxu0 }
 0x1a2   : > { %v2054_v25 = vmul.f32 %v2569_v44, %v2053_v8  ;;  %v1198_v21 = vsel %vm1197_vm13, %v2567_v12, %v1194_v5  ;;  %v1827_v50 = vmul.f32 %v2577_v2, %v4082_v11  ;;  %vm971_vm2 = vweird.f32 %v2575_v52  ;;  %v567_v5 = vpop.f32.mrf.mxu2 }
 0x1a3   : > { %2155 = vst.msk [vmem:[%s2939_s30 + $0x60] sm:$0xff] %vm356_vm1, %v2123_v18  ;;  %v1203_v37 = vsel %vm4087_vm6, %v1202_v55, %v1198_v21  ;;  %v967_v7 = vsub.f32 1.0, %v966_v63  ;;  %v1837_v15 = vand.u32 2147483648, %v4082_v11  ;;  %v1214_v27 = vand.u32 2147483647, %v4114_v54  ;;  %vm972_vm6 = vmor %vm970_vm14, %vm971_vm2 }
 0x1a4   : > { %v2055_v0 = vadd.f32 %v2569_v44, %v2054_v25  ;;  %v1278_v49 = vmul.f32 %v1203_v37, %v3886_v39  ;;  %v1828_v12 = vsub.f32 1.0, %v1827_v50  ;;  %v1216_v22 = vand.u32 2147483648, %v4114_v54 }
 0x1a5   : > { %v968_v58 = vmul.f32 %v2575_v52, %v967_v7  ;;  %vm1831_vm3 = vweird.f32 %v4082_v11  ;;  %vm4146_vm4 = vcmp.eq.f32.partialorder %v1835_v6, 8.507059e+37  ;;  %2580 = vrcp.f32 %v4127_v16 }
 0x1a6   : > { %v2059_v13 = vsel %vm2058_vm0, %v2569_v44, %v2055_v0  ;;  %1310 = vst.msk [vmem:[%s2929_s26 + $0xe0] sm:$0xff] %vm356_vm1, %v1278_v49  ;;  %v1829_v45 = vmul.f32 %v2577_v2, %v1828_v12  ;;  %vm1832_vm5 = vweird.f32 %v2577_v2  ;;  %v1838_v20 = vor.u32 1.1754944e-38, %v1837_v15 }
 0x1a7   : > { %v2064_v39 = vsel %vm4104_vm11, %v2063_v51, %v2059_v13  ;;  %v969_v28 = vadd.f32 %v2575_v52, %v968_v58  ;;  %v2579_v55 = vpop.eup %2578  ;;  %vm1210_vm8 = vweird.f32 %v4114_v54  ;;  %v702_v4 = vmul.f32 1.442695, %v656_v43  ;;  %vm1833_vm9 = vmor %vm1831_vm3, %vm1832_vm5  ;;  %v1380_v51 = vpop.f32.mrf.mxu1 }
 0x1a8   : > { %v2139_v56 = vmul.f32 %v2064_v39, %v4002_v42  ;;  %v1517_v9 = vsub.f32 0.0, %v4080_v17  ;;  %v1830_v44 = vadd.f32 %v2577_v2, %v1829_v45  ;;  %v1206_v42 = vmul.f32 %v2579_v55, %v4114_v54 }
 0x1a9   : > { %v973_v14 = vsel %vm972_vm6, %v2575_v52, %v969_v28  ;;  %vm4160_vm7 = vcmp.eq.f32.partialorder %v1214_v27, 8.507059e+37  ;;  %v1217_v47 = vor.u32 1.1754944e-38, %v1216_v22  ;;  %v2075_v24 = vand.u32 2147483647, %v4127_v16  ;;  %v1428_v28 = vpop.f32.mrf.mxu3 }
 0x1aa   : > { %2171 = vst.msk [vmem:[%s2939_s30 + $0xe0] sm:$0xff] %vm356_vm1, %v2139_v56  ;;  %v978_v38 = vsel %vm4121_vm15, %v977_v40, %v973_v14  ;;  %v2077_v57 = vand.u32 2147483648, %v4127_v16  ;;  %2582 = vpow2.f32 %v702_v4  ;;  %v1834_v31 = vsel %vm1833_vm9, %v2577_v2, %v1830_v44 }
 0x1ab   : > { %v1263_v3 = vmul.f32 %v978_v38, %v4011_v41  ;;  %v1207_v48 = vsub.f32 1.0, %v1206_v42  ;;  %v1563_v53 = vmul.f32 1.442695, %v1517_v9  ;;  %v2581_v43 = vpop.eup %2580  ;;  %v1839_v1 = vsel %vm4146_vm4, %v1838_v20, %v1834_v31 }
 0x1ac   : > { %v604_v26 = vmul.f32 %v3856_v23, %v564_v35  ;;  %v1465_v11 = vmul.f32 %v3904_v36, %v1425_v60  ;;  %v589_v8 = vmul.f32 %v3856_v23, %v519_v19  ;;  %v2124_v52 = vmul.f32 %v1839_v1, %v4017_v62 }
 0x1ad   : > { %1295 = vst.msk [vmem:[%s2929_s26 + $0x68] sm:$0xff] %vm356_vm1, %v1263_v3  ;;  %v1208_v41 = vmul.f32 %v2579_v55, %v1207_v48  ;;  %vm1211_vm10 = vweird.f32 %v2579_v55  ;;  %v2067_v33 = vmul.f32 %v2581_v43, %v4127_v16  ;;  %2584 = vpow2.f32 %v1563_v53 }
 0x1ae   : > { %v4182_v18 = vadd.f32 %v3872_v10, %v604_v26  ;;  %v4185_v25 = vadd.f32 %v3880_v59, %v1465_v11  ;;  %v4188_v63 = vadd.f32 %v3872_v10, %v589_v8  ;;  %2156 = vst.msk [vmem:[%s2939_s30 + $0x68] sm:$0xff] %vm356_vm1, %v2124_v52  ;;  %vm2072_vm11 = vweird.f32 %v2581_v43  ;;  %vm1212_vm14 = vmor %vm1210_vm8, %vm1211_vm10 }
 0x1af   : > { %v1209_v46 = vadd.f32 %v2579_v55, %v1208_v41  ;;  %v2068_v40 = vsub.f32 1.0, %v2067_v33  ;;  %v1450_v62 = vmul.f32 %v3904_v36, %v1380_v51  ;;  %v605_v0 = vmul.f32 %v3856_v23, %v567_v5 }
 0x1b0   : > { %v2583_v2 = vpop.eup %2582  ;;  %v672_v21 = vsub.f32 0.0, %v4182_v18  ;;  %v1533_v6 = vsub.f32 0.0, %v4185_v25  ;;  %v657_v37 = vsub.f32 0.0, %v4188_v63  ;;  %vm2071_vm12 = vweird.f32 %v4127_v16 }
 0x1b1   : > { %v1213_v7 = vsel %vm1212_vm14, %v2579_v55, %v1209_v46  ;;  %v2069_v50 = vmul.f32 %v2581_v43, %v2068_v40  ;;  %v752_v35 = vadd.f32 1.0, %v2583_v2  ;;  %v4200_v49 = vadd.f32 %v3880_v59, %v1450_v62  ;;  %vm2073_vm13 = vmor %vm2071_vm12, %vm2072_vm11 }
 0x1b2   : > { %v1218_v15 = vsel %vm4160_vm7, %v1217_v47, %v1213_v7  ;;  %v734_v54 = vmul.f32 1.442695, %v672_v21  ;;  %v1595_v27 = vmul.f32 1.442695, %v1533_v6  ;;  %v704_v13 = vmul.f32 1.442695, %v657_v37 }
 0x1b3   : > { %v1279_v58 = vmul.f32 %v1218_v15, %v4020_v34  ;;  %v2070_v12 = vadd.f32 %v2581_v43, %v2069_v50  ;;  %2586 = vrcp.f32 %v752_v35  ;;  %v2585_v23 = vpop.eup %2584  ;;  %vm2076_vm15 = vcmp.eq.f32.partialorder %v2075_v24, 8.507059e+37 }
 0x1b4   : > { %v2078_v22 = vor.u32 1.1754944e-38, %v2077_v57  ;;  %2588 = vpow2.f32 %v734_v54  ;;  %v1518_v39 = vsub.f32 0.0, %v4200_v49  ;;  %v1613_v56 = vadd.f32 1.0, %v2585_v23 }
 0x1b5   : > { %1311 = vst.msk [vmem:[%s2929_s26 + $0xe8] sm:$0xff] %vm356_vm1, %v1279_v58  ;;  %v2074_v30 = vsel %vm2073_vm13, %v2581_v43, %v2070_v12  ;;  %2590 = vpow2.f32 %v1595_v27  ;;  %v4211_v34 = vadd.f32 %v3872_v10, %v605_v0  ;;  %v1466_v20 = vmul.f32 %v3904_v36, %v1428_v28 }
 0x1b6   : > { %v2079_v16 = vsel %vm2076_vm15, %v2078_v22, %v2074_v30  ;;  %2592 = vpow2.f32 %v704_v13  ;;  %v1565_v55 = vmul.f32 1.442695, %v1518_v39  ;;  %v989_v10 = vand.u32 2147483647, %v752_v35 }
 0x1b7   : > { %v2140_v45 = vmul.f32 %v2079_v16, %v4041_v32  ;;  %2594 = vrcp.f32 %v1613_v56  ;;  %v673_v9 = vsub.f32 0.0, %v4211_v34  ;;  %v991_v61 = vand.u32 2147483648, %v752_v35 }
 0x1b8   : > { %2596 = vpow2.f32 %v1565_v55  ;;  %v4223_v38 = vadd.f32 %v3880_v59, %v1466_v20  ;;  %vm985_vm0 = vweird.f32 %v752_v35  ;;  %vm4227_vm3 = vcmp.eq.f32.partialorder %v989_v10, 8.507059e+37 }
 0x1b9   : > { %v2587_v4 = vpop.eup %2586  ;;  %2172 = vst.msk [vmem:[%s2939_s30 + $0xe8] sm:$0xff] %vm356_vm1, %v2140_v45  ;;  %v736_v24 = vmul.f32 1.442695, %v673_v9  ;;  %v992_v48 = vor.u32 1.1754944e-38, %v991_v61  ;;  %v1850_v53 = vand.u32 2147483647, %v1613_v56  ;;  %vm1846_vm5 = vweird.f32 %v1613_v56 }
 0x1ba   : > { %v2589_v14 = vpop.eup %2588  ;;  %v981_v44 = vmul.f32 %v2587_v4, %v752_v35  ;;  %vm986_vm2 = vweird.f32 %v2587_v4  ;;  %v1852_v43 = vand.u32 2147483648, %v1613_v56  ;;  %v1534_v8 = vsub.f32 0.0, %v4223_v38 }
 0x1bb   : > { %v2591_v42 = vpop.eup %2590  ;;  %v4218_v47 = vadd.f32 1.0, %v2589_v14  ;;  %vm987_vm4 = vmor %vm985_vm0, %vm986_vm2  ;;  %vm4241_vm8 = vcmp.eq.f32.partialorder %v1850_v53, 8.507059e+37 }
 0x1bc   : > { %v2593_v60 = vpop.eup %2592  ;;  %v982_v19 = vsub.f32 1.0, %v981_v44  ;;  %v4220_v32 = vadd.f32 1.0, %v2591_v42  ;;  %v1853_v62 = vor.u32 1.1754944e-38, %v1852_v43  ;;  %v1597_v0 = vmul.f32 1.442695, %v1534_v8 }
 0x1bd   : > { %v2595_v36 = vpop.eup %2594  ;;  %2598 = vrcp.f32 %v4218_v47  ;;  %v4231_v11 = vadd.f32 1.0, %v2593_v60  ;;  %v1229_v51 = vand.u32 2147483647, %v4218_v47  ;;  %vm1225_vm9 = vweird.f32 %v4218_v47 }
 0x1be   : > { %v983_v57 = vmul.f32 %v2587_v4, %v982_v19  ;;  %v1842_v3 = vmul.f32 %v2595_v36, %v1613_v56  ;;  %2600 = vrcp.f32 %v4220_v32  ;;  %v2597_v1 = vpop.eup %2596  ;;  %vm1847_vm6 = vweird.f32 %v2595_v36 }
 0x1bf   : > { %2602 = vpow2.f32 %v736_v24  ;;  %v4237_v33 = vadd.f32 1.0, %v2597_v1  ;;  %vm1848_vm7 = vmor %vm1846_vm5, %vm1847_vm6  ;;  %vm4250_vm10 = vcmp.eq.f32.partialorder %v1229_v51, 8.507059e+37  ;;  %v1231_v50 = vand.u32 2147483648, %v4218_v47 }
 0x1c0   : > { %v984_v59 = vadd.f32 %v2587_v4, %v983_v57  ;;  %v1843_v26 = vsub.f32 1.0, %v1842_v3  ;;  %2604 = vrcp.f32 %v4231_v11  ;;  %v2090_v54 = vand.u32 2147483647, %v4220_v32 }
 0x1c1   : > { %2606 = vrcp.f32 %v4237_v33  ;;  %v2092_v12 = vand.u32 2147483648, %v4220_v32  ;;  %v1232_v56 = vor.u32 1.1754944e-38, %v1231_v50  ;;  %vm2086_vm12 = vweird.f32 %v4220_v32 }
 0x1c2   : > { %v988_v52 = vsel %vm987_vm4, %v2587_v4, %v984_v59  ;;  %v1844_v41 = vmul.f32 %v2595_v36, %v1843_v26  ;;  %2608 = vpow2.f32 %v1597_v0  ;;  %v1004_v55 = vand.u32 2147483647, %v4231_v11 }
 0x1c3   : > { %v2599_v5 = vpop.eup %2598  ;;  %v993_v46 = vsel %vm4227_vm3, %v992_v48, %v988_v52  ;;  %vm2091_vm15 = vcmp.eq.f32.partialorder %v2090_v54, 8.507059e+37  ;;  %v1006_v4 = vand.u32 2147483648, %v4231_v11  ;;  %v2093_v44 = vor.u32 1.1754944e-38, %v2092_v12 }
 0x1c4   : > { %v2601_v2 = vpop.eup %2600  ;;  %v1264_v21 = vmul.f32 %v993_v46, %v4077_v29  ;;  %v1845_v6 = vadd.f32 %v2595_v36, %v1844_v41  ;;  %v1221_v37 = vmul.f32 %v2599_v5, %v4218_v47  ;;  %vm1226_vm11 = vweird.f32 %v2599_v5 }
 0x1c5   : > { %v2082_v35 = vmul.f32 %v2601_v2, %v4220_v32  ;;  %v2603_v27 = vpop.eup %2602  ;;  %vm2087_vm14 = vweird.f32 %v2601_v2  ;;  %vm1227_vm13 = vmor %vm1225_vm9, %vm1226_vm11  ;;  %vm1000_vm2 = vweird.f32 %v4231_v11  ;;  %vm4281_vm4 = vcmp.eq.f32.partialorder %v1004_v55, 8.507059e+37 }
 0x1c6   : > { %1296 = vst.msk [vmem:[%s2929_s26 + $0x70] sm:$0xff] %vm356_vm1, %v1264_v21  ;;  %v1849_v29 = vsel %vm1848_vm7, %v2595_v36, %v1845_v6  ;;  %v1222_v15 = vsub.f32 1.0, %v1221_v37  ;;  %v2605_v23 = vpop.eup %2604  ;;  %v4264_v30 = vadd.f32 1.0, %v2603_v27  ;;  %vm2088_vm0 = vmor %vm2086_vm12, %vm2087_vm14  ;;  %v1007_v3 = vor.u32 1.1754944e-38, %v1006_v4 }
 0x1c7   : > { %v1854_v13 = vsel %vm4241_vm8, %v1853_v62, %v1849_v29  ;;  %v2083_v58 = vsub.f32 1.0, %v2082_v35  ;;  %v996_v16 = vmul.f32 %v2605_v23, %v4231_v11  ;;  %v2607_v9 = vpop.eup %2606  ;;  %vm1001_vm3 = vweird.f32 %v2605_v23 }
 0x1c8   : > { %v2125_v22 = vmul.f32 %v1854_v13, %v4080_v17  ;;  %v1223_v39 = vmul.f32 %v2599_v5, %v1222_v15  ;;  %2610 = vrcp.f32 %v4264_v30  ;;  %v1857_v47 = vmul.f32 %v2607_v9, %v4237_v33  ;;  %v2609_v60 = vpop.eup %2608  ;;  %vm1002_vm5 = vmor %vm1000_vm2, %vm1001_vm3 }
 0x1c9   : > { %v2084_v28 = vmul.f32 %v2601_v2, %v2083_v58  ;;  %v997_v20 = vsub.f32 1.0, %v996_v16  ;;  %vm1861_vm6 = vweird.f32 %v4237_v33  ;;  %v1867_v53 = vand.u32 2147483648, %v4237_v33 }
 0x1ca   : > { %2157 = vst.msk [vmem:[%s2939_s30 + $0x70] sm:$0xff] %vm356_vm1, %v2125_v22  ;;  %v1224_v45 = vadd.f32 %v2599_v5, %v1223_v39  ;;  %v1858_v31 = vsub.f32 1.0, %v1857_v47  ;;  %v1630_v43 = vadd.f32 1.0, %v2609_v60  ;;  %vm1862_vm8 = vweird.f32 %v2607_v9 }
 0x1cb   : > { %v2085_v17 = vadd.f32 %v2601_v2, %v2084_v28  ;;  %v998_v61 = vmul.f32 %v2605_v23, %v997_v20  ;;  %vm1863_vm7 = vmor %vm1861_vm6, %vm1862_vm8  ;;  %v1868_v52 = vor.u32 1.1754944e-38, %v1867_v53  ;;  %v1246_v41 = vand.u32 2147483648, %v4264_v30 }
 0x1cc   : > { %v1228_v14 = vsel %vm1227_vm13, %v2599_v5, %v1224_v45  ;;  %v1859_v1 = vmul.f32 %v2607_v9, %v1858_v31  ;;  %2612 = vrcp.f32 %v1630_v43  ;;  %v1244_v46 = vand.u32 2147483647, %v4264_v30 }
 0x1cd   : > { %v1233_v42 = vsel %vm4250_vm10, %v1232_v56, %v1228_v14  ;;  %v2089_v10 = vsel %vm2088_vm0, %v2601_v2, %v2085_v17  ;;  %v999_v57 = vadd.f32 %v2605_v23, %v998_v61  ;;  %vm1240_vm11 = vweird.f32 %v4264_v30 }
 0x1ce   : > { %v1280_v19 = vmul.f32 %v1233_v42, %v4182_v18  ;;  %v2094_v32 = vsel %vm2091_vm15, %v2093_v44, %v2089_v10  ;;  %v2611_v48 = vpop.eup %2610  ;;  %v1865_v18 = vand.u32 2147483647, %v4237_v33  ;;  %v1860_v8 = vadd.f32 %v2607_v9, %v1859_v1 }
 0x1cf   : > { %v2141_v24 = vmul.f32 %v2094_v32, %v4185_v25  ;;  %v1003_v25 = vsel %vm1002_vm5, %v2605_v23, %v999_v57  ;;  %v1236_v59 = vmul.f32 %v2611_v48, %v4264_v30  ;;  %vm1241_vm10 = vweird.f32 %v2611_v48 }
 0x1d0   : > { %1312 = vst.msk [vmem:[%s2929_s26 + $0xf0] sm:$0xff] %vm356_vm1, %v1280_v19  ;;  %v1008_v26 = vsel %vm4281_vm4, %v1007_v3, %v1003_v25  ;;  %vm1866_vm9 = vcmp.eq.f32.partialorder %v1865_v18, 8.507059e+37  ;;  %v1864_v33 = vsel %vm1863_vm7, %v2607_v9, %v1860_v8  ;;  %vm1242_vm14 = vmor %vm1240_vm11, %vm1241_vm10  ;;  %v1247_v21 = vor.u32 1.1754944e-38, %v1246_v41 }
 0x1d1   : > { %2173 = vst.msk [vmem:[%s2939_s30 + $0xf0] sm:$0xff] %vm356_vm1, %v2141_v24  ;;  %v1265_v11 = vmul.f32 %v1008_v26, %v4188_v63  ;;  %v1237_v51 = vsub.f32 1.0, %v1236_v59  ;;  %v1869_v40 = vsel %vm1866_vm9, %v1868_v52, %v1864_v33  ;;  %vm1245_vm12 = vcmp.eq.f32.partialorder %v1244_v46, 8.507059e+37 }
 0x1d2   : > { %v2126_v62 = vmul.f32 %v1869_v40, %v4200_v49  ;;  %v2613_v2 = vpop.eup %2612  ;;  %v2107_v35 = vand.u32 2147483648, %v1630_v43  ;;  %v2105_v29 = vand.u32 2147483647, %v1630_v43  ;;  %vm2101_vm15 = vweird.f32 %v1630_v43 }
 0x1d3   : > { %1297 = vst.msk [vmem:[%s2929_s26 + $0x78] sm:$0xff] %vm356_vm1, %v1265_v11  ;;  %v1238_v5 = vmul.f32 %v2611_v48, %v1237_v51  ;;  %v2097_v37 = vmul.f32 %v2613_v2, %v1630_v43  ;;  %vm2102_vm13 = vweird.f32 %v2613_v2 }
 0x1d4   : > { %2158 = vst.msk [vmem:[%s2939_s30 + $0x78] sm:$0xff] %vm356_vm1, %v2126_v62  ;;  %vm2103_vm0 = vmor %vm2101_vm15, %vm2102_vm13  ;;  %v2108_v54 = vor.u32 1.1754944e-38, %v2107_v35  ;;  %vm2106_vm2 = vcmp.eq.f32.partialorder %v2105_v29, 8.507059e+37 }
 0x1d5   : > { %v1239_v63 = vadd.f32 %v2611_v48, %v1238_v5  ;;  %v2098_v50 = vsub.f32 1.0, %v2097_v37 }
 0x1d7   : > { %v1243_v6 = vsel %vm1242_vm14, %v2611_v48, %v1239_v63  ;;  %v2099_v49 = vmul.f32 %v2613_v2, %v2098_v50 }
 0x1d8   : > { %v1248_v0 = vsel %vm1245_vm12, %v1247_v21, %v1243_v6 }
 0x1d9   : > { %v1281_v7 = vmul.f32 %v1248_v0, %v4211_v34  ;;  %v2100_v15 = vadd.f32 %v2613_v2, %v2099_v49 }
 0x1db   : > { %1313 = vst.msk [vmem:[%s2929_s26 + $0xf8] sm:$0xff] %vm356_vm1, %v1281_v7  ;;  %v2104_v27 = vsel %vm2103_vm0, %v2613_v2, %v2100_v15 }
 0x1dc   : > { %v2109_v13 = vsel %vm2106_vm2, %v2108_v54, %v2104_v27 }
 0x1dd   : > { %v2142_v58 = vmul.f32 %v2109_v13, %v4223_v38 }
 0x1df   : > { %2174 = vst.msk [vmem:[%s2939_s30 + $0xf8] sm:$0xff] %vm356_vm1, %v2142_v58 }
 0x1e0 PF: > { %s19_s27 = sadd.s32 1, %s2628_s27  }
 0x1e1   : > { %p16_p4 = scmp.ge.s32.totalorder %s19_s27, 4  }
 0x1e3   :  { %18 = sbr.rel (!%p16_p4) target bundleno = 1 (0x1), region = 90 }

</bundles_post_ra>
